<compile_context>
chip_gen: v7x
topology: tpu7x:2x2x1
jax: 0.10.0
libtpu: 0.0.40
codegen_flags: <defaults>
</compile_context>

<pallas_src>
import functools
import math

import jax
import jax.numpy as jnp
from jax.experimental import pallas as pl
from jax.experimental.pallas import tpu as pltpu


_VMEM_LIMIT = 48 * 1024 * 1024   # safe on v5e/v6e (128 MiB) and v7x (64 MiB physical)


def _pick_tile(dim, target, align):
    """Divisor of `dim` that is a multiple of `align`: largest <= target, else the
    smallest aligned divisor above target; full dim only as a last resort."""
    if dim <= target:
        return dim
    t = (target // align) * align
    while t >= align:
        if dim % t == 0:
            return t
        t -= align
    t = ((target // align) + 1) * align
    while t < dim:
        if dim % t == 0:
            return t
        t += align
    return dim


# ---------------------------------------------------------------------------
# Fused LayerNorm + dense (ln1 -> qkv, ln2 -> fc[+GELU])
# ---------------------------------------------------------------------------

def _ln_dense_kernel(x_ref, g_ref, b_ref, w_ref, bias_ref, o_ref, h_ref, *, activation):
    """o = act(LayerNorm(x) @ w + bias).  LN(x) is computed once per row tile
    (under pl.when(j == 0)), cached bf16 in VMEM scratch, and reused for all N tiles."""
    @pl.when(pl.program_id(1) == 0)
    def _():
        x = x_ref[...].astype(jnp.float32)
        mean = jnp.mean(x, axis=-1, keepdims=True)
        xc = x - mean
        var = jnp.mean(xc * xc, axis=-1, keepdims=True)
        inv = jax.lax.rsqrt(var + 1e-5)                       # GPT-2 layer_norm_epsilon
        h_ref[...] = (xc * inv * g_ref[...] + b_ref[...]).astype(h_ref.dtype)

    y = jnp.dot(h_ref[...], w_ref[...], preferred_element_type=jnp.float32)
    y = y + bias_ref[...]
    if activation == "gelu_new":                              # GPT-2 tanh-approx GELU (f32)
        c = math.sqrt(2.0 / math.pi)
        y = 0.5 * y * (1.0 + jnp.tanh(c * (y + 0.044715 * y * y * y)))
    o_ref[...] = y.astype(o_ref.dtype)


def ln_dense(x, g, b, w, bias, activation="none", tm=512, tn=768):
    M, K = x.shape
    N = w.shape[1]
    tm = _pick_tile(M, tm, 8)
    tn = _pick_tile(N, tn, 128)
    return pl.pallas_call(
        functools.partial(_ln_dense_kernel, activation=activation),
        grid=(M // tm, N // tn),
        in_specs=[
            pl.BlockSpec((tm, K), lambda i, j: (i, 0)),
            pl.BlockSpec((1, K), lambda i, j: (0, 0)),
            pl.BlockSpec((1, K), lambda i, j: (0, 0)),
            pl.BlockSpec((K, tn), lambda i, j: (0, j)),
            pl.BlockSpec((1, tn), lambda i, j: (0, j)),
        ],
        out_specs=pl.BlockSpec((tm, tn), lambda i, j: (i, j)),
        out_shape=jax.ShapeDtypeStruct((M, N), jnp.bfloat16),
        scratch_shapes=[pltpu.VMEM((tm, K), jnp.bfloat16)],
        compiler_params=pltpu.CompilerParams(
            # N axis is "arbitrary": the LN scratch is carried across it.
            dimension_semantics=("parallel", "arbitrary"),
            vmem_limit_bytes=_VMEM_LIMIT),
    )(x, g.reshape(1, K), b.reshape(1, K), w, bias.reshape(1, N))


# ---------------------------------------------------------------------------
# K-tiled dense with f32 accumulator (+ fused residual / ReLU)
# ---------------------------------------------------------------------------

def _dense_acc_kernel(x_ref, w_ref, b_ref, *rest, activation, has_residual):
    """K-tiled o = act(x @ w + bias) [+ residual].  Note: activation is applied to
    (x@w + bias) and the residual is added afterwards; current call sites never use
    both together (transformer proj: residual only, classifier head: ReLU only)."""
    if has_residual:
        res_ref, o_ref, acc_ref = rest
    else:
        o_ref, acc_ref = rest
    kk = pl.program_id(2)

    @pl.when(kk == 0)
    def _():
        acc_ref[...] = jnp.zeros_like(acc_ref)

    acc_ref[...] += jnp.dot(x_ref[...], w_ref[...], preferred_element_type=jnp.float32)

    @pl.when(kk == pl.num_programs(2) - 1)
    def _():
        y = acc_ref[...] + b_ref[...]
        if activation == "relu":
            y = jnp.maximum(y, 0.0)
        if has_residual:
            y = y + res_ref[...].astype(jnp.float32)
        o_ref[...] = y.astype(o_ref.dtype)


def dense_acc(x, w, bias, residual=None, activation="none",
              out_dtype=jnp.float32, tm=512, tn=768, tk=1024):
    M, K = x.shape
    N = w.shape[1]
    tm = _pick_tile(M, tm, 8)
    tn = _pick_tile(N, tn, 128)
    tk = _pick_tile(K, tk, 128)
    in_specs = [
        pl.BlockSpec((tm, tk), lambda i, j, k: (i, k)),
        pl.BlockSpec((tk, tn), lambda i, j, k: (k, j)),
        pl.BlockSpec((1, tn), lambda i, j, k: (0, j)),
    ]
    args = [x, w, bias.reshape(1, N)]
    if residual is not None:
        in_specs.append(pl.BlockSpec((tm, tn), lambda i, j, k: (i, j)))
        args.append(residual)
    return pl.pallas_call(
        functools.partial(_dense_acc_kernel, activation=activation,
                          has_residual=residual is not None),
        grid=(M // tm, N // tn, K // tk),
        in_specs=in_specs,
        out_specs=pl.BlockSpec((tm, tn), lambda i, j, k: (i, j)),
        out_shape=jax.ShapeDtypeStruct((M, N), out_dtype),
        scratch_shapes=[pltpu.VMEM((tm, tn), jnp.float32)],
        compiler_params=pltpu.CompilerParams(
            dimension_semantics=("parallel", "parallel", "arbitrary"),
            vmem_limit_bytes=_VMEM_LIMIT),
    )(*args)


# ---------------------------------------------------------------------------
# Attention (causal + padding), per-head-pair grid at GPT-2 scale
# ---------------------------------------------------------------------------

def _causal_pad(S, padb_ref):
    """(S, S) additive mask: in-kernel causal iota mask + streamed (1, S) padding bias."""
    row = jax.lax.broadcasted_iota(jnp.int32, (S, S), 0)
    col = jax.lax.broadcasted_iota(jnp.int32, (S, S), 1)
    causal = jnp.where(col <= row, 0.0, -1e9).astype(jnp.float32)
    return causal + padb_ref[0]                       # (1, S) broadcasts over rows


def _attn_heads(q, k, v, causal_pad, head_dim, out_dtype):
    """q/k/v: (S, hg*hd) bf16 slabs for hg heads.  Returns (S, hg*hd) attention output."""
    hg = q.shape[1] // head_dim
    scale = 1.0 / math.sqrt(head_dim)
    outs = []
    for h in range(hg):
        sl = slice(h * head_dim, (h + 1) * head_dim)
        s = jnp.einsum("qd,kd->qk", q[:, sl], k[:, sl],
                       preferred_element_type=jnp.float32)        # (S, S) f32
        s = s * scale + causal_pad                                # scale applied in f32
        m = jnp.max(s, axis=-1, keepdims=True)
        p = jnp.exp(s - m)                                        # f32 exp (EUP)
        p = p * pl.reciprocal(jnp.sum(p, axis=-1, keepdims=True), approx=True)
        outs.append(jnp.dot(p.astype(v.dtype), v[:, sl],
                            preferred_element_type=jnp.float32))  # (S, hd) f32
    return jnp.concatenate(outs, axis=-1).astype(out_dtype)


def _attn_pair_kernel(q_ref, k_ref, v_ref, padb_ref, o_ref, *, head_dim):
    S = q_ref.shape[1]
    cp = _causal_pad(S, padb_ref)
    o_ref[0] = _attn_heads(q_ref[0], k_ref[0], v_ref[0], cp, head_dim, o_ref.dtype)


def _attn_slab_kernel(qkv_ref, padb_ref, o_ref, *, n_heads, head_dim):
    S = qkv_ref.shape[1]
    H = n_heads * head_dim
    cp = _causal_pad(S, padb_ref)
    slab = qkv_ref[0]                                             # (S, 3H) bf16
    o_ref[0] = _attn_heads(slab[:, 0:H], slab[:, H:2 * H], slab[:, 2 * H:3 * H],
                           cp, head_dim, o_ref.dtype)


def attention(qkv, pad_bias, *, n_heads, head_dim):
    """qkv: (B, S, 3H) bf16 slab [q | k | v]; pad_bias: (B, 1, S) f32 additive key bias."""
    B, S, threeH = qkv.shape
    H = n_heads * head_dim
    bw = 2 * head_dim                                # head-pair column width

    if bw % 128 == 0 and n_heads % 2 == 0:
        # GPT-2 scale: per-head-pair blocks, lane-dense 128-wide output stores,
        # small live intermediates, second "parallel" axis for megacore.
        nb = H // bw                                 # head-pair blocks per q/k/v slab
        return pl.pallas_call(
            functools.partial(_attn_pair_kernel, head_dim=head_dim),
            grid=(B, nb),
            in_specs=[
                pl.BlockSpec((1, S, bw), lambda b, h: (b, 0, h)),
                pl.BlockSpec((1, S, bw), lambda b, h: (b, 0, h + nb)),
                pl.BlockSpec((1, S, bw), lambda b, h: (b, 0, h + 2 * nb)),
                pl.BlockSpec((1, 1, S), lambda b, h: (b, 0, 0)),
            ],
            out_specs=pl.BlockSpec((1, S, bw), lambda b, h: (b, 0, h)),
            out_shape=jax.ShapeDtypeStruct((B, S, H), jnp.bfloat16),
            compiler_params=pltpu.CompilerParams(
                dimension_semantics=("parallel", "parallel"),
                vmem_limit_bytes=_VMEM_LIMIT),
        )(qkv, qkv, qkv, pad_bias)

    # Toy-scale fallback: whole (1, S, 3H) slab per batch element (last dim = full dim).
    return pl.pallas_call(
        functools.partial(_attn_slab_kernel, n_heads=n_heads, head_dim=head_dim),
        grid=(B,),
        in_specs=[
            pl.BlockSpec((1, S, threeH), lambda b: (b, 0, 0)),
            pl.BlockSpec((1, 1, S), lambda b: (b, 0, 0)),
        ],
        out_specs=pl.BlockSpec((1, S, H), lambda b: (b, 0, 0)),
        out_shape=jax.ShapeDtypeStruct((B, S, H), jnp.bfloat16),
        compiler_params=pltpu.CompilerParams(
            dimension_semantics=("parallel",),
            vmem_limit_bytes=_VMEM_LIMIT),
    )(qkv, pad_bias)


# ---------------------------------------------------------------------------
# Final LayerNorm
# ---------------------------------------------------------------------------

def _layernorm_kernel(x_ref, g_ref, b_ref, o_ref):
    x = x_ref[...].astype(jnp.float32)
    mean = jnp.mean(x, axis=-1, keepdims=True)
    xc = x - mean
    var = jnp.mean(xc * xc, axis=-1, keepdims=True)
    inv = jax.lax.rsqrt(var + 1e-5)
    o_ref[...] = (xc * inv * g_ref[...] + b_ref[...]).astype(o_ref.dtype)


def layernorm(x, g, b, tm=512, out_dtype=jnp.bfloat16):
    M, H = x.shape
    tm = _pick_tile(M, tm, 8)
    return pl.pallas_call(
        _layernorm_kernel,
        grid=(M // tm,),
        in_specs=[pl.BlockSpec((tm, H), lambda i: (i, 0)),
                  pl.BlockSpec((1, H), lambda i: (0, 0)),
                  pl.BlockSpec((1, H), lambda i: (0, 0))],
        out_specs=pl.BlockSpec((tm, H), lambda i: (i, 0)),
        out_shape=jax.ShapeDtypeStruct((M, H), out_dtype),
        compiler_params=pltpu.CompilerParams(
            dimension_semantics=("parallel",),
            vmem_limit_bytes=_VMEM_LIMIT),
    )(x, g.reshape(1, H), b.reshape(1, H))


# ---------------------------------------------------------------------------
# GPT2Classifier forward (glue around the kernels)
# ---------------------------------------------------------------------------

def gpt2_classifier_forward(params, input_ids, mask, *, hidden, heads, n_classes=5):
    B, S = input_ids.shape
    H, nH = hidden, heads
    hd = H // nH

    # Embedding gathers stay in plain JAX glue.
    x = params["wte"][input_ids] + params["wpe"][jnp.arange(S)][None, :, :]   # (B,S,H) f32
    x = x.reshape(B * S, H)

    # Only a tiny (B, 1, S) additive padding bias is streamed to the attention kernel;
    # the causal part is built in-kernel from iota (no (B,S,S) f32 mask DMA).
    pad_bias = jnp.where(mask[:, None, :] > 0, 0.0, -1e9).astype(jnp.float32)  # (B,1,S)

    for layer in params["layers"]:
        # --- attention block: LN fused into qkv matmul; residual fused into proj ---
        qkv = ln_dense(x, layer["ln1_g"], layer["ln1_b"],
                       layer["attn_w"], layer["attn_b"])                      # (B*S,3H) bf16
        a = attention(qkv.reshape(B, S, 3 * H), pad_bias,
                      n_heads=nH, head_dim=hd)                                # (B,S,H) bf16
        x = dense_acc(a.reshape(B * S, H), layer["proj_w"], layer["proj_b"],
                      residual=x)                                             # (B*S,H) f32

        # --- MLP block: LN fused into fc matmul (+GELU); residual fused into proj ---
        h = ln_dense(x, layer["ln2_g"], layer["ln2_b"],
                     layer["fc_w"], layer["fc_b"], activation="gelu_new")     # (B*S,4H) bf16
        x = dense_acc(h, layer["mlp_proj_w"], layer["mlp_proj_b"],
                      residual=x)                                             # (B*S,H) f32

    # Final layer norm, then classifier: view(B, S*H) -> Linear(S*H, 5) -> ReLU.
    xf = layernorm(x, params["lnf_g"], params["lnf_b"])                       # (B*S,H) bf16
    flat = xf.reshape(B, S * H)
    # Classifier N padded 5 -> 8 (full-N output block); K = S*H tiled over the grid.
    logits_pad = dense_acc(flat, params["cls_w"], params["cls_b"],
                           activation="relu", tn=8, tk=16384)                 # (B,8) f32
    return logits_pad[:, :n_classes]


# ---------------------------------------------------------------------------
# Deterministic parameter init (shapes follow GPT2Model + Linear(S*H, 5))
# ---------------------------------------------------------------------------

def init_params(key, *, vocab, hidden, heads, layers, max_seq_len, n_classes=5):
    del heads  # head count only affects reshapes, not parameter shapes
    std = 0.02

    def nrm(k, shape):
        return jax.random.normal(k, shape, jnp.float32) * std

    keys = jax.random.split(key, 3 + layers)
    params = {
        "wte": nrm(keys[0], (vocab, hidden)),
        "wpe": nrm(keys[1], (max_seq_len, hidden)),
        "lnf_g": jnp.ones((hidden,), jnp.float32),
        "lnf_b": jnp.zeros((hidden,), jnp.float32),
        # PyTorch Linear weight layout is (out_features, in_features).
        "cls_w": nrm(keys[2], (n_classes, max_seq_len * hidden)),
        "cls_b": jnp.zeros((n_classes,), jnp.float32),
        "layers": [],
    }
    for li in range(layers):
        lk = jax.random.split(keys[3 + li], 4)
        params["layers"].append(dict(
            ln1_g=jnp.ones((hidden,), jnp.float32), ln1_b=jnp.zeros((hidden,), jnp.float32),
            attn_w=nrm(lk[0], (hidden, 3 * hidden)),         # GPT-2 Conv1D: y = x @ W + b
            attn_b=jnp.zeros((3 * hidden,), jnp.float32),
            proj_w=nrm(lk[1], (hidden, hidden)),
            proj_b=jnp.zeros((hidden,), jnp.float32),
            ln2_g=jnp.ones((hidden,), jnp.float32), ln2_b=jnp.zeros((hidden,), jnp.float32),
            fc_w=nrm(lk[2], (hidden, 4 * hidden)),
            fc_b=jnp.zeros((4 * hidden,), jnp.float32),
            mlp_proj_w=nrm(lk[3], (4 * hidden, hidden)),
            mlp_proj_b=jnp.zeros((hidden,), jnp.float32),
        ))
    return params


def prepare_params(raw, *, n_classes=5, n_pad=8):
    """Cast matmul weights to bf16; transpose + pad classifier weight to 8 cols (not 128)."""
    bf = lambda a: a.astype(jnp.bfloat16)
    cls_w = raw["cls_w"].T                                      # (S*H, 5)
    cls_w = jnp.pad(cls_w, ((0, 0), (0, n_pad - n_classes)))    # (S*H, 8)
    cls_b = jnp.zeros((n_pad,), jnp.float32).at[:n_classes].set(raw["cls_b"])
    out = {
        "wte": raw["wte"], "wpe": raw["wpe"],
        "lnf_g": raw["lnf_g"], "lnf_b": raw["lnf_b"],
        "cls_w": bf(cls_w), "cls_b": cls_b,
        "layers": [],
    }
    for l in raw["layers"]:
        out["layers"].append(dict(
            ln1_g=l["ln1_g"], ln1_b=l["ln1_b"],
            attn_w=bf(l["attn_w"]), attn_b=l["attn_b"],
            proj_w=bf(l["proj_w"]), proj_b=l["proj_b"],
            ln2_g=l["ln2_g"], ln2_b=l["ln2_b"],
            fc_w=bf(l["fc_w"]), fc_b=l["fc_b"],
            mlp_proj_w=bf(l["mlp_proj_w"]), mlp_proj_b=l["mlp_proj_b"],
        ))
    return out


# ---------------------------------------------------------------------------

if __name__ == "__main__":
    B, S = 2, 8                       # batch, max_seq_len (small stand-in for 384)
    VOCAB, HIDDEN, HEADS, LAYERS = 128, 32, 4, 2   # small stand-in for GPT-2 (768, 12, 12)

    key = jax.random.PRNGKey(0)
    pkey, ikey = jax.random.split(key)
    raw = init_params(pkey, vocab=VOCAB, hidden=HIDDEN, heads=HEADS,
                      layers=LAYERS, max_seq_len=S)
    params = prepare_params(raw)

    input_ids = jax.random.randint(ikey, (B, S), 0, VOCAB, dtype=jnp.int32)
    mask = jnp.array([[1, 1, 1, 1, 1, 1, 1, 1],
                      [1, 1, 1, 1, 1, 1, 0, 0]], dtype=jnp.int32)

    fwd = jax.jit(functools.partial(gpt2_classifier_forward, hidden=HIDDEN, heads=HEADS))
    out = jax.block_until_ready(fwd(params, input_ids, mask))
    assert out.shape == (B, 5) and out.dtype == jnp.float32
    assert bool(jnp.all(out >= 0.0))  # ReLU output is non-negative
    print("KERNEL_OK")
</pallas_src>

<mosaic_0001>
module attributes {stable_mosaic.version = 11 : i64} {
  func.func @_ln_dense_kernel(%arg0: i32, %arg1: i32, %arg2: memref<16x32xf32, #tpu.memory_space<vmem>>, %arg3: memref<1x32xf32, #tpu.memory_space<vmem>>, %arg4: memref<1x32xf32, #tpu.memory_space<vmem>>, %arg5: memref<32x96xbf16, #tpu.memory_space<vmem>>, %arg6: memref<1x96xf32, #tpu.memory_space<vmem>>, %arg7: memref<16x96xbf16, #tpu.memory_space<vmem>>, %arg8: memref<16x32xbf16, #tpu.memory_space<vmem>>) attributes {dimension_semantics = [#tpu.dimension_semantics<parallel>, #tpu.dimension_semantics<arbitrary>], iteration_bounds = array<i64: 1, 1>, scalar_prefetch = 0 : i64, scratch_operands = 1 : i64, tpu.core_type = #tpu.core_type<tc>, window_params = [{transform_indices = @transform_0, window_bounds = array<i64: 16, 32>}, {pipeline_mode = #tpu.pipeline_mode<synchronous>, transform_indices = @transform_1, window_bounds = array<i64: 1, 32>}, {pipeline_mode = #tpu.pipeline_mode<synchronous>, transform_indices = @transform_2, window_bounds = array<i64: 1, 32>}, {transform_indices = @transform_3, window_bounds = array<i64: 32, 96>}, {transform_indices = @transform_4, window_bounds = array<i64: 1, 96>}, {transform_indices = @transform_5, window_bounds = array<i64: 16, 96>}]} {
    %c0_i32 = arith.constant 0 : i32
    %0 = arith.cmpi eq, %arg1, %c0_i32 : i32
    %1 = arith.extui %0 : i1 to i32
    %c0_i32_0 = arith.constant 0 : i32
    %2 = arith.cmpi ne, %1, %c0_i32_0 : i32
    scf.if %2 {
      %c0_8 = arith.constant 0 : index
      %c0_9 = arith.constant 0 : index
      %11 = vector.load %arg2[%c0_8, %c0_9] : memref<16x32xf32, #tpu.memory_space<vmem>>, vector<16x32xf32>
      %cst_10 = arith.constant dense<0.000000e+00> : vector<16xf32>
      %12 = vector.multi_reduction <add>, %11, %cst_10 [1] : vector<16x32xf32> to vector<16xf32>
      %13 = vector.shape_cast %12 : vector<16xf32> to vector<16x1xf32>
      %cst_11 = arith.constant 3.200000e+01 : f32
      %14 = vector.broadcast %cst_11 : f32 to vector<16x1xf32>
      %15 = arith.divf %13, %14 : vector<16x1xf32>
      %16 = vector.broadcast %15 : vector<16x1xf32> to vector<16x32xf32>
      %17 = arith.subf %11, %16 : vector<16x32xf32>
      %18 = arith.mulf %17, %17 : vector<16x32xf32>
      %cst_12 = arith.constant dense<0.000000e+00> : vector<16xf32>
      %19 = vector.multi_reduction <add>, %18, %cst_12 [1] : vector<16x32xf32> to vector<16xf32>
      %20 = vector.shape_cast %19 : vector<16xf32> to vector<16x1xf32>
      %cst_13 = arith.constant 3.200000e+01 : f32
      %21 = vector.broadcast %cst_13 : f32 to vector<16x1xf32>
      %22 = arith.divf %20, %21 : vector<16x1xf32>
      %cst_14 = arith.constant 9.99999974E-6 : f32
      %23 = vector.broadcast %cst_14 : f32 to vector<16x1xf32>
      %24 = arith.addf %22, %23 : vector<16x1xf32>
      %25 = math.rsqrt %24 : vector<16x1xf32>
      %26 = vector.broadcast %25 : vector<16x1xf32> to vector<16x32xf32>
      %27 = arith.mulf %17, %26 : vector<16x32xf32>
      %c0_15 = arith.constant 0 : index
      %c0_16 = arith.constant 0 : index
      %28 = vector.load %arg3[%c0_15, %c0_16] : memref<1x32xf32, #tpu.memory_space<vmem>>, vector<1x32xf32>
      %29 = vector.broadcast %28 : vector<1x32xf32> to vector<16x32xf32>
      %30 = arith.mulf %27, %29 : vector<16x32xf32>
      %c0_17 = arith.constant 0 : index
      %c0_18 = arith.constant 0 : index
      %31 = vector.load %arg4[%c0_17, %c0_18] : memref<1x32xf32, #tpu.memory_space<vmem>>, vector<1x32xf32>
      %32 = vector.broadcast %31 : vector<1x32xf32> to vector<16x32xf32>
      %33 = arith.addf %30, %32 : vector<16x32xf32>
      %34 = arith.truncf %33 : vector<16x32xf32> to vector<16x32xbf16>
      %c0_19 = arith.constant 0 : index
      %c0_20 = arith.constant 0 : index
      %35 = vector.load %arg8[%c0_19, %c0_20] : memref<16x32xbf16, #tpu.memory_space<vmem>>, vector<16x32xbf16>
      tpu.vector_store %arg8[%c0_19, %c0_20], %34 {strides = array<i32>} : memref<16x32xbf16, #tpu.memory_space<vmem>>, vector<16x32xbf16>,
    } else {
    }
    %c0 = arith.constant 0 : index
    %c0_1 = arith.constant 0 : index
    %3 = vector.load %arg8[%c0, %c0_1] : memref<16x32xbf16, #tpu.memory_space<vmem>>, vector<16x32xbf16>
    %c0_2 = arith.constant 0 : index
    %c0_3 = arith.constant 0 : index
    %4 = vector.load %arg5[%c0_2, %c0_3] : memref<32x96xbf16, #tpu.memory_space<vmem>>, vector<32x96xbf16>
    %cst = arith.constant dense<0.000000e+00> : vector<16x96xf32>
    %5 = tpu.matmul %3, %4, %cst {dimension_numbers = #tpu.dot_dimension_numbers<[1], [0], [0], [1], [0, 0, 1, 1], [], []>} : vector<16x32xbf16>, vector<32x96xbf16>, vector<16x96xf32> -> vector<16x96xf32>
    %c0_4 = arith.constant 0 : index
    %c0_5 = arith.constant 0 : index
    %6 = vector.load %arg6[%c0_4, %c0_5] : memref<1x96xf32, #tpu.memory_space<vmem>>, vector<1x96xf32>
    %7 = vector.broadcast %6 : vector<1x96xf32> to vector<16x96xf32>
    %8 = arith.addf %5, %7 : vector<16x96xf32>
    %9 = arith.truncf %8 : vector<16x96xf32> to vector<16x96xbf16>
    %c0_6 = arith.constant 0 : index
    %c0_7 = arith.constant 0 : index
    %10 = vector.load %arg7[%c0_6, %c0_7] : memref<16x96xbf16, #tpu.memory_space<vmem>>, vector<16x96xbf16>
    tpu.vector_store %arg7[%c0_6, %c0_7], %9 {strides = array<i32>} : memref<16x96xbf16, #tpu.memory_space<vmem>>, vector<16x96xbf16>,
    return
  }
  func.func @transform_0(%arg0: i32, %arg1: i32) -> (i32, i32) {
    %c0_i32 = arith.constant 0 : i32
    %c0_i32_0 = arith.constant 0 : i32
    return %arg0, %c0_i32 : i32, i32
  }
  func.func @transform_1(%arg0: i32, %arg1: i32) -> (i32, i32) {
    %c0_i32 = arith.constant 0 : i32
    %c0_i32_0 = arith.constant 0 : i32
    %c0_i32_1 = arith.constant 0 : i32
    return %c0_i32, %c0_i32_0 : i32, i32
  }
  func.func @transform_2(%arg0: i32, %arg1: i32) -> (i32, i32) {
    %c0_i32 = arith.constant 0 : i32
    %c0_i32_0 = arith.constant 0 : i32
    %c0_i32_1 = arith.constant 0 : i32
    return %c0_i32, %c0_i32_0 : i32, i32
  }
  func.func @transform_3(%arg0: i32, %arg1: i32) -> (i32, i32) {
    %c0_i32 = arith.constant 0 : i32
    %c0_i32_0 = arith.constant 0 : i32
    return %c0_i32, %arg1 : i32, i32
  }
  func.func @transform_4(%arg0: i32, %arg1: i32) -> (i32, i32) {
    %c0_i32 = arith.constant 0 : i32
    %c0_i32_0 = arith.constant 0 : i32
    return %c0_i32, %arg1 : i32, i32
  }
  func.func @transform_5(%arg0: i32, %arg1: i32) -> (i32, i32) {
    %c0_i32 = arith.constant 0 : i32
    return %arg0, %arg1 : i32, i32
  }
}

module attributes {stable_mosaic.version = 11 : i64} {
  func.func @_dense_acc_kernel(%arg0: i32, %arg1: i32, %arg2: i32, %arg3: memref<16x32xbf16, #tpu.memory_space<vmem>>, %arg4: memref<32x32xbf16, #tpu.memory_space<vmem>>, %arg5: memref<1x32xf32, #tpu.memory_space<vmem>>, %arg6: memref<16x32xf32, #tpu.memory_space<vmem>>, %arg7: memref<16x32xf32, #tpu.memory_space<vmem>>, %arg8: memref<16x32xf32, #tpu.memory_space<vmem>>) attributes {dimension_semantics = [#tpu.dimension_semantics<parallel>, #tpu.dimension_semantics<parallel>, #tpu.dimension_semantics<arbitrary>], iteration_bounds = array<i64: 1, 1, 1>, scalar_prefetch = 0 : i64, scratch_operands = 1 : i64, tpu.core_type = #tpu.core_type<tc>, window_params = [{transform_indices = @transform_0, window_bounds = array<i64: 16, 32>}, {transform_indices = @transform_1, window_bounds = array<i64: 32, 32>}, {transform_indices = @transform_2, window_bounds = array<i64: 1, 32>}, {transform_indices = @transform_3, window_bounds = array<i64: 16, 32>}, {transform_indices = @transform_4, window_bounds = array<i64: 16, 32>}]} {
    %c0_i32 = arith.constant 0 : i32
    %0 = arith.cmpi eq, %arg2, %c0_i32 : i32
    %1 = arith.extui %0 : i1 to i32
    %c0_i32_0 = arith.constant 0 : i32
    %2 = arith.cmpi ne, %1, %c0_i32_0 : i32
    scf.if %2 {
      %cst_10 = arith.constant 0.000000e+00 : f32
      %12 = vector.broadcast %cst_10 : f32 to vector<16x32xf32>
      %c0_11 = arith.constant 0 : index
      %c0_12 = arith.constant 0 : index
      %13 = vector.load %arg8[%c0_11, %c0_12] : memref<16x32xf32, #tpu.memory_space<vmem>>, vector<16x32xf32>
      tpu.vector_store %arg8[%c0_11, %c0_12], %12 {strides = array<i32>} : memref<16x32xf32, #tpu.memory_space<vmem>>, vector<16x32xf32>,
    } else {
    }
    %c0 = arith.constant 0 : index
    %c0_1 = arith.constant 0 : index
    %3 = vector.load %arg8[%c0, %c0_1] : memref<16x32xf32, #tpu.memory_space<vmem>>, vector<16x32xf32>
    %c0_2 = arith.constant 0 : index
    %c0_3 = arith.constant 0 : index
    %4 = vector.load %arg3[%c0_2, %c0_3] : memref<16x32xbf16, #tpu.memory_space<vmem>>, vector<16x32xbf16>
    %c0_4 = arith.constant 0 : index
    %c0_5 = arith.constant 0 : index
    %5 = vector.load %arg4[%c0_4, %c0_5] : memref<32x32xbf16, #tpu.memory_space<vmem>>, vector<32x32xbf16>
    %cst = arith.constant dense<0.000000e+00> : vector<16x32xf32>
    %6 = tpu.matmul %4, %5, %cst {dimension_numbers = #tpu.dot_dimension_numbers<[1], [0], [0], [1], [0, 0, 1, 1], [], []>} : vector<16x32xbf16>, vector<32x32xbf16>, vector<16x32xf32> -> vector<16x32xf32>
    %7 = arith.addf %3, %6 : vector<16x32xf32>
    %c0_6 = arith.constant 0 : index
    %c0_7 = arith.constant 0 : index
    %8 = vector.load %arg8[%c0_6, %c0_7] : memref<16x32xf32, #tpu.memory_space<vmem>>, vector<16x32xf32>
    tpu.vector_store %arg8[%c0_6, %c0_7], %7 {strides = array<i32>} : memref<16x32xf32, #tpu.memory_space<vmem>>, vector<16x32xf32>,
    %c0_i32_8 = arith.constant 0 : i32
    %9 = arith.cmpi eq, %arg2, %c0_i32_8 : i32
    %10 = arith.extui %9 : i1 to i32
    %c0_i32_9 = arith.constant 0 : i32
    %11 = arith.cmpi ne, %10, %c0_i32_9 : i32
    scf.if %11 {
      %c0_10 = arith.constant 0 : index
      %c0_11 = arith.constant 0 : index
      %12 = vector.load %arg8[%c0_10, %c0_11] : memref<16x32xf32, #tpu.memory_space<vmem>>, vector<16x32xf32>
      %c0_12 = arith.constant 0 : index
      %c0_13 = arith.constant 0 : index
      %13 = vector.load %arg5[%c0_12, %c0_13] : memref<1x32xf32, #tpu.memory_space<vmem>>, vector<1x32xf32>
      %14 = vector.broadcast %13 : vector<1x32xf32> to vector<16x32xf32>
      %15 = arith.addf %12, %14 : vector<16x32xf32>
      %c0_14 = arith.constant 0 : index
      %c0_15 = arith.constant 0 : index
      %16 = vector.load %arg6[%c0_14, %c0_15] : memref<16x32xf32, #tpu.memory_space<vmem>>, vector<16x32xf32>
      %17 = arith.addf %15, %16 : vector<16x32xf32>
      %c0_16 = arith.constant 0 : index
      %c0_17 = arith.constant 0 : index
      %18 = vector.load %arg7[%c0_16, %c0_17] : memref<16x32xf32, #tpu.memory_space<vmem>>, vector<16x32xf32>
      tpu.vector_store %arg7[%c0_16, %c0_17], %17 {strides = array<i32>} : memref<16x32xf32, #tpu.memory_space<vmem>>, vector<16x32xf32>,
    } else {
    }
    return
  }
  func.func @transform_0(%arg0: i32, %arg1: i32, %arg2: i32) -> (i32, i32) {
    %c0_i32 = arith.constant 0 : i32
    return %arg0, %arg2 : i32, i32
  }
  func.func @transform_1(%arg0: i32, %arg1: i32, %arg2: i32) -> (i32, i32) {
    %c0_i32 = arith.constant 0 : i32
    return %arg2, %arg1 : i32, i32
  }
  func.func @transform_2(%arg0: i32, %arg1: i32, %arg2: i32) -> (i32, i32) {
    %c0_i32 = arith.constant 0 : i32
    %c0_i32_0 = arith.constant 0 : i32
    return %c0_i32, %arg1 : i32, i32
  }
  func.func @transform_3(%arg0: i32, %arg1: i32, %arg2: i32) -> (i32, i32) {
    %c0_i32 = arith.constant 0 : i32
    return %arg0, %arg1 : i32, i32
  }
  func.func @transform_4(%arg0: i32, %arg1: i32, %arg2: i32) -> (i32, i32) {
    %c0_i32 = arith.constant 0 : i32
    return %arg0, %arg1 : i32, i32
  }
}

module attributes {stable_mosaic.version = 11 : i64} {
  func.func @_attn_slab_kernel(%arg0: i32, %arg1: memref<1x8x96xbf16, #tpu.memory_space<vmem>>, %arg2: memref<1x1x8xf32, #tpu.memory_space<vmem>>, %arg3: memref<1x8x32xbf16, #tpu.memory_space<vmem>>) attributes {dimension_semantics = [#tpu.dimension_semantics<parallel>], iteration_bounds = array<i64: 2>, scalar_prefetch = 0 : i64, scratch_operands = 0 : i64, tpu.core_type = #tpu.core_type<tc>, window_params = [{transform_indices = @transform_0, window_bounds = array<i64: 1, 8, 96>}, {transform_indices = @transform_1, window_bounds = array<i64: 1, 1, 8>}, {transform_indices = @transform_2, window_bounds = array<i64: 1, 8, 32>}]} {
    %0 = tpu.iota {dimensions = array<i32: 0>} : vector<8x8xi32>
    %1 = tpu.iota {dimensions = array<i32: 1>} : vector<8x8xi32>
    %2 = arith.cmpi sle, %1, %0 : vector<8x8xi32>
    %cst = arith.constant 0.000000e+00 : f32
    %cst_0 = arith.constant -1.000000e+09 : f32
    %3 = vector.broadcast %cst : f32 to vector<8x8xf32>
    %4 = vector.broadcast %cst_0 : f32 to vector<8x8xf32>
    %5 = arith.select %2, %3, %4 : vector<8x8xi1>, vector<8x8xf32>
    %c0 = arith.constant 0 : index
    %c0_1 = arith.constant 0 : index
    %c0_2 = arith.constant 0 : index
    %6 = vector.load %arg2[%c0, %c0_1, %c0_2] : memref<1x1x8xf32, #tpu.memory_space<vmem>>, vector<1x1x8xf32>
    %7 = vector.shape_cast %6 : vector<1x1x8xf32> to vector<1x8xf32>
    %8 = vector.broadcast %7 : vector<1x8xf32> to vector<8x8xf32>
    %9 = arith.addf %5, %8 : vector<8x8xf32>
    %c0_3 = arith.constant 0 : index
    %c0_4 = arith.constant 0 : index
    %c0_5 = arith.constant 0 : index
    %10 = vector.load %arg1[%c0_3, %c0_4, %c0_5] : memref<1x8x96xbf16, #tpu.memory_space<vmem>>, vector<1x8x96xbf16>
    %11 = vector.shape_cast %10 : vector<1x8x96xbf16> to vector<8x96xbf16>
    %12 = vector.extract_strided_slice %11 {offsets = [0, 0], sizes = [8, 32], strides = [1, 1]} : vector<8x96xbf16> to vector<8x32xbf16>
    %13 = vector.extract_strided_slice %11 {offsets = [0, 32], sizes = [8, 32], strides = [1, 1]} : vector<8x96xbf16> to vector<8x32xbf16>
    %14 = vector.extract_strided_slice %11 {offsets = [0, 64], sizes = [8, 32], strides = [1, 1]} : vector<8x96xbf16> to vector<8x32xbf16>
    %15 = vector.extract_strided_slice %12 {offsets = [0, 0], sizes = [8, 8], strides = [1, 1]} : vector<8x32xbf16> to vector<8x8xbf16>
    %16 = vector.extract_strided_slice %13 {offsets = [0, 0], sizes = [8, 8], strides = [1, 1]} : vector<8x32xbf16> to vector<8x8xbf16>
    "tpu.trace_start"() <{level = 10 : i32, message = "qd,kd->qk"}> : () -> ()
    %cst_6 = arith.constant dense<0.000000e+00> : vector<8x8xf32>
    %17 = tpu.matmul %15, %16, %cst_6 {dimension_numbers = #tpu.dot_dimension_numbers<[1], [1], [0], [0], [0, 0, 1, 0], [], []>} : vector<8x8xbf16>, vector<8x8xbf16>, vector<8x8xf32> -> vector<8x8xf32>
    "tpu.trace_stop"() : () -> ()
    %cst_7 = arith.constant 0.353553385 : f32
    %18 = vector.broadcast %cst_7 : f32 to vector<8x8xf32>
    %19 = arith.mulf %17, %18 : vector<8x8xf32>
    %20 = arith.addf %19, %9 : vector<8x8xf32>
    %cst_8 = arith.constant dense<0xFF800000> : vector<8xf32>
    %21 = vector.multi_reduction <maximumf>, %20, %cst_8 [1] : vector<8x8xf32> to vector<8xf32>
    %22 = vector.shape_cast %21 : vector<8xf32> to vector<8x1xf32>
    %23 = vector.broadcast %22 : vector<8x1xf32> to vector<8x8xf32>
    %24 = arith.subf %20, %23 : vector<8x8xf32>
    %25 = math.exp %24 : vector<8x8xf32>
    %cst_9 = arith.constant dense<0.000000e+00> : vector<8xf32>
    %26 = vector.multi_reduction <add>, %25, %cst_9 [1] : vector<8x8xf32> to vector<8xf32>
    %27 = vector.shape_cast %26 : vector<8xf32> to vector<8x1xf32>
    %28 = tpu.reciprocal %27 {approx = true} : vector<8x1xf32> -> vector<8x1xf32>
    %29 = vector.broadcast %28 : vector<8x1xf32> to vector<8x8xf32>
    %30 = arith.mulf %25, %29 : vector<8x8xf32>
    %31 = arith.truncf %30 : vector<8x8xf32> to vector<8x8xbf16>
    %32 = vector.extract_strided_slice %14 {offsets = [0, 0], sizes = [8, 8], strides = [1, 1]} : vector<8x32xbf16> to vector<8x8xbf16>
    %cst_10 = arith.constant dense<0.000000e+00> : vector<8x8xf32>
    %33 = tpu.matmul %31, %32, %cst_10 {dimension_numbers = #tpu.dot_dimension_numbers<[1], [0], [0], [1], [0, 0, 1, 1], [], []>} : vector<8x8xbf16>, vector<8x8xbf16>, vector<8x8xf32> -> vector<8x8xf32>
    %34 = vector.extract_strided_slice %12 {offsets = [0, 8], sizes = [8, 8], strides = [1, 1]} : vector<8x32xbf16> to vector<8x8xbf16>
    %35 = vector.extract_strided_slice %13 {offsets = [0, 8], sizes = [8, 8], strides = [1, 1]} : vector<8x32xbf16> to vector<8x8xbf16>
    "tpu.trace_start"() <{level = 10 : i32, message = "qd,kd->qk"}> : () -> ()
    %cst_11 = arith.constant dense<0.000000e+00> : vector<8x8xf32>
    %36 = tpu.matmul %34, %35, %cst_11 {dimension_numbers = #tpu.dot_dimension_numbers<[1], [1], [0], [0], [0, 0, 1, 0], [], []>} : vector<8x8xbf16>, vector<8x8xbf16>, vector<8x8xf32> -> vector<8x8xf32>
    "tpu.trace_stop"() : () -> ()
    %cst_12 = arith.constant 0.353553385 : f32
    %37 = vector.broadcast %cst_12 : f32 to vector<8x8xf32>
    %38 = arith.mulf %36, %37 : vector<8x8xf32>
    %39 = arith.addf %38, %9 : vector<8x8xf32>
    %cst_13 = arith.constant dense<0xFF800000> : vector<8xf32>
    %40 = vector.multi_reduction <maximumf>, %39, %cst_13 [1] : vector<8x8xf32> to vector<8xf32>
    %41 = vector.shape_cast %40 : vector<8xf32> to vector<8x1xf32>
    %42 = vector.broadcast %41 : vector<8x1xf32> to vector<8x8xf32>
    %43 = arith.subf %39, %42 : vector<8x8xf32>
    %44 = math.exp %43 : vector<8x8xf32>
    %cst_14 = arith.constant dense<0.000000e+00> : vector<8xf32>
    %45 = vector.multi_reduction <add>, %44, %cst_14 [1] : vector<8x8xf32> to vector<8xf32>
    %46 = vector.shape_cast %45 : vector<8xf32> to vector<8x1xf32>
    %47 = tpu.reciprocal %46 {approx = true} : vector<8x1xf32> -> vector<8x1xf32>
    %48 = vector.broadcast %47 : vector<8x1xf32> to vector<8x8xf32>
    %49 = arith.mulf %44, %48 : vector<8x8xf32>
    %50 = arith.truncf %49 : vector<8x8xf32> to vector<8x8xbf16>
    %51 = vector.extract_strided_slice %14 {offsets = [0, 8], sizes = [8, 8], strides = [1, 1]} : vector<8x32xbf16> to vector<8x8xbf16>
    %cst_15 = arith.constant dense<0.000000e+00> : vector<8x8xf32>
    %52 = tpu.matmul %50, %51, %cst_15 {dimension_numbers = #tpu.dot_dimension_numbers<[1], [0], [0], [1], [0, 0, 1, 1], [], []>} : vector<8x8xbf16>, vector<8x8xbf16>, vector<8x8xf32> -> vector<8x8xf32>
    %53 = vector.extract_strided_slice %12 {offsets = [0, 16], sizes = [8, 8], strides = [1, 1]} : vector<8x32xbf16> to vector<8x8xbf16>
    %54 = vector.extract_strided_slice %13 {offsets = [0, 16], sizes = [8, 8], strides = [1, 1]} : vector<8x32xbf16> to vector<8x8xbf16>
    "tpu.trace_start"() <{level = 10 : i32, message = "qd,kd->qk"}> : () -> ()
    %cst_16 = arith.constant dense<0.000000e+00> : vector<8x8xf32>
    %55 = tpu.matmul %53, %54, %cst_16 {dimension_numbers = #tpu.dot_dimension_numbers<[1], [1], [0], [0], [0, 0, 1, 0], [], []>} : vector<8x8xbf16>, vector<8x8xbf16>, vector<8x8xf32> -> vector<8x8xf32>
    "tpu.trace_stop"() : () -> ()
    %cst_17 = arith.constant 0.353553385 : f32
    %56 = vector.broadcast %cst_17 : f32 to vector<8x8xf32>
    %57 = arith.mulf %55, %56 : vector<8x8xf32>
    %58 = arith.addf %57, %9 : vector<8x8xf32>
    %cst_18 = arith.constant dense<0xFF800000> : vector<8xf32>
    %59 = vector.multi_reduction <maximumf>, %58, %cst_18 [1] : vector<8x8xf32> to vector<8xf32>
    %60 = vector.shape_cast %59 : vector<8xf32> to vector<8x1xf32>
    %61 = vector.broadcast %60 : vector<8x1xf32> to vector<8x8xf32>
    %62 = arith.subf %58, %61 : vector<8x8xf32>
    %63 = math.exp %62 : vector<8x8xf32>
    %cst_19 = arith.constant dense<0.000000e+00> : vector<8xf32>
    %64 = vector.multi_reduction <add>, %63, %cst_19 [1] : vector<8x8xf32> to vector<8xf32>
    %65 = vector.shape_cast %64 : vector<8xf32> to vector<8x1xf32>
    %66 = tpu.reciprocal %65 {approx = true} : vector<8x1xf32> -> vector<8x1xf32>
    %67 = vector.broadcast %66 : vector<8x1xf32> to vector<8x8xf32>
    %68 = arith.mulf %63, %67 : vector<8x8xf32>
    %69 = arith.truncf %68 : vector<8x8xf32> to vector<8x8xbf16>
    %70 = vector.extract_strided_slice %14 {offsets = [0, 16], sizes = [8, 8], strides = [1, 1]} : vector<8x32xbf16> to vector<8x8xbf16>
    %cst_20 = arith.constant dense<0.000000e+00> : vector<8x8xf32>
    %71 = tpu.matmul %69, %70, %cst_20 {dimension_numbers = #tpu.dot_dimension_numbers<[1], [0], [0], [1], [0, 0, 1, 1], [], []>} : vector<8x8xbf16>, vector<8x8xbf16>, vector<8x8xf32> -> vector<8x8xf32>
    %72 = vector.extract_strided_slice %12 {offsets = [0, 24], sizes = [8, 8], strides = [1, 1]} : vector<8x32xbf16> to vector<8x8xbf16>
    %73 = vector.extract_strided_slice %13 {offsets = [0, 24], sizes = [8, 8], strides = [1, 1]} : vector<8x32xbf16> to vector<8x8xbf16>
    "tpu.trace_start"() <{level = 10 : i32, message = "qd,kd->qk"}> : () -> ()
    %cst_21 = arith.constant dense<0.000000e+00> : vector<8x8xf32>
    %74 = tpu.matmul %72, %73, %cst_21 {dimension_numbers = #tpu.dot_dimension_numbers<[1], [1], [0], [0], [0, 0, 1, 0], [], []>} : vector<8x8xbf16>, vector<8x8xbf16>, vector<8x8xf32> -> vector<8x8xf32>
    "tpu.trace_stop"() : () -> ()
    %cst_22 = arith.constant 0.353553385 : f32
    %75 = vector.broadcast %cst_22 : f32 to vector<8x8xf32>
    %76 = arith.mulf %74, %75 : vector<8x8xf32>
    %77 = arith.addf %76, %9 : vector<8x8xf32>
    %cst_23 = arith.constant dense<0xFF800000> : vector<8xf32>
    %78 = vector.multi_reduction <maximumf>, %77, %cst_23 [1] : vector<8x8xf32> to vector<8xf32>
    %79 = vector.shape_cast %78 : vector<8xf32> to vector<8x1xf32>
    %80 = vector.broadcast %79 : vector<8x1xf32> to vector<8x8xf32>
    %81 = arith.subf %77, %80 : vector<8x8xf32>
    %82 = math.exp %81 : vector<8x8xf32>
    %cst_24 = arith.constant dense<0.000000e+00> : vector<8xf32>
    %83 = vector.multi_reduction <add>, %82, %cst_24 [1] : vector<8x8xf32> to vector<8xf32>
    %84 = vector.shape_cast %83 : vector<8xf32> to vector<8x1xf32>
    %85 = tpu.reciprocal %84 {approx = true} : vector<8x1xf32> -> vector<8x1xf32>
    %86 = vector.broadcast %85 : vector<8x1xf32> to vector<8x8xf32>
    %87 = arith.mulf %82, %86 : vector<8x8xf32>
    %88 = arith.truncf %87 : vector<8x8xf32> to vector<8x8xbf16>
    %89 = vector.extract_strided_slice %14 {offsets = [0, 24], sizes = [8, 8], strides = [1, 1]} : vector<8x32xbf16> to vector<8x8xbf16>
    %cst_25 = arith.constant dense<0.000000e+00> : vector<8x8xf32>
    %90 = tpu.matmul %88, %89, %cst_25 {dimension_numbers = #tpu.dot_dimension_numbers<[1], [0], [0], [1], [0, 0, 1, 1], [], []>} : vector<8x8xbf16>, vector<8x8xbf16>, vector<8x8xf32> -> vector<8x8xf32>
    %91 = tpu.concatenate %33, %52, %71, %90 in 1 : vector<8x8xf32>, vector<8x8xf32>, vector<8x8xf32>, vector<8x8xf32> -> vector<8x32xf32>
    %92 = arith.truncf %91 : vector<8x32xf32> to vector<8x32xbf16>
    %c0_26 = arith.constant 0 : index
    %c0_27 = arith.constant 0 : index
    %c0_28 = arith.constant 0 : index
    %93 = vector.load %arg3[%c0_26, %c0_27, %c0_28] : memref<1x8x32xbf16, #tpu.memory_space<vmem>>, vector<1x8x32xbf16>
    %94 = vector.shape_cast %93 : vector<1x8x32xbf16> to vector<8x32xbf16>
    %95 = vector.shape_cast %92 : vector<8x32xbf16> to vector<1x8x32xbf16>
    tpu.vector_store %arg3[%c0_26, %c0_27, %c0_28], %95 {strides = array<i32>} : memref<1x8x32xbf16, #tpu.memory_space<vmem>>, vector<1x8x32xbf16>,
    return
  }
  func.func @transform_0(%arg0: i32) -> (i32, i32, i32) {
    %c0_i32 = arith.constant 0 : i32
    %c0_i32_0 = arith.constant 0 : i32
    %c0_i32_1 = arith.constant 0 : i32
    return %arg0, %c0_i32, %c0_i32_0 : i32, i32, i32
  }
  func.func @transform_1(%arg0: i32) -> (i32, i32, i32) {
    %c0_i32 = arith.constant 0 : i32
    %c0_i32_0 = arith.constant 0 : i32
    %c0_i32_1 = arith.constant 0 : i32
    return %arg0, %c0_i32, %c0_i32_0 : i32, i32, i32
  }
  func.func @transform_2(%arg0: i32) -> (i32, i32, i32) {
    %c0_i32 = arith.constant 0 : i32
    %c0_i32_0 = arith.constant 0 : i32
    %c0_i32_1 = arith.constant 0 : i32
    return %arg0, %c0_i32, %c0_i32_0 : i32, i32, i32
  }
}

module attributes {stable_mosaic.version = 11 : i64} {
  func.func @_ln_dense_kernel(%arg0: i32, %arg1: i32, %arg2: memref<16x32xf32, #tpu.memory_space<vmem>>, %arg3: memref<1x32xf32, #tpu.memory_space<vmem>>, %arg4: memref<1x32xf32, #tpu.memory_space<vmem>>, %arg5: memref<32x128xbf16, #tpu.memory_space<vmem>>, %arg6: memref<1x128xf32, #tpu.memory_space<vmem>>, %arg7: memref<16x128xbf16, #tpu.memory_space<vmem>>, %arg8: memref<16x32xbf16, #tpu.memory_space<vmem>>) attributes {dimension_semantics = [#tpu.dimension_semantics<parallel>, #tpu.dimension_semantics<arbitrary>], iteration_bounds = array<i64: 1, 1>, scalar_prefetch = 0 : i64, scratch_operands = 1 : i64, tpu.core_type = #tpu.core_type<tc>, window_params = [{transform_indices = @transform_0, window_bounds = array<i64: 16, 32>}, {pipeline_mode = #tpu.pipeline_mode<synchronous>, transform_indices = @transform_1, window_bounds = array<i64: 1, 32>}, {pipeline_mode = #tpu.pipeline_mode<synchronous>, transform_indices = @transform_2, window_bounds = array<i64: 1, 32>}, {transform_indices = @transform_3, window_bounds = array<i64: 32, 128>}, {transform_indices = @transform_4, window_bounds = array<i64: 1, 128>}, {transform_indices = @transform_5, window_bounds = array<i64: 16, 128>}]} {
    %c0_i32 = arith.constant 0 : i32
    %0 = arith.cmpi eq, %arg1, %c0_i32 : i32
    %1 = arith.extui %0 : i1 to i32
    %c0_i32_0 = arith.constant 0 : i32
    %2 = arith.cmpi ne, %1, %c0_i32_0 : i32
    scf.if %2 {
      %c0_12 = arith.constant 0 : index
      %c0_13 = arith.constant 0 : index
      %24 = vector.load %arg2[%c0_12, %c0_13] : memref<16x32xf32, #tpu.memory_space<vmem>>, vector<16x32xf32>
      %cst_14 = arith.constant dense<0.000000e+00> : vector<16xf32>
      %25 = vector.multi_reduction <add>, %24, %cst_14 [1] : vector<16x32xf32> to vector<16xf32>
      %26 = vector.shape_cast %25 : vector<16xf32> to vector<16x1xf32>
      %cst_15 = arith.constant 3.200000e+01 : f32
      %27 = vector.broadcast %cst_15 : f32 to vector<16x1xf32>
      %28 = arith.divf %26, %27 : vector<16x1xf32>
      %29 = vector.broadcast %28 : vector<16x1xf32> to vector<16x32xf32>
      %30 = arith.subf %24, %29 : vector<16x32xf32>
      %31 = arith.mulf %30, %30 : vector<16x32xf32>
      %cst_16 = arith.constant dense<0.000000e+00> : vector<16xf32>
      %32 = vector.multi_reduction <add>, %31, %cst_16 [1] : vector<16x32xf32> to vector<16xf32>
      %33 = vector.shape_cast %32 : vector<16xf32> to vector<16x1xf32>
      %cst_17 = arith.constant 3.200000e+01 : f32
      %34 = vector.broadcast %cst_17 : f32 to vector<16x1xf32>
      %35 = arith.divf %33, %34 : vector<16x1xf32>
      %cst_18 = arith.constant 9.99999974E-6 : f32
      %36 = vector.broadcast %cst_18 : f32 to vector<16x1xf32>
      %37 = arith.addf %35, %36 : vector<16x1xf32>
      %38 = math.rsqrt %37 : vector<16x1xf32>
      %39 = vector.broadcast %38 : vector<16x1xf32> to vector<16x32xf32>
      %40 = arith.mulf %30, %39 : vector<16x32xf32>
      %c0_19 = arith.constant 0 : index
      %c0_20 = arith.constant 0 : index
      %41 = vector.load %arg3[%c0_19, %c0_20] : memref<1x32xf32, #tpu.memory_space<vmem>>, vector<1x32xf32>
      %42 = vector.broadcast %41 : vector<1x32xf32> to vector<16x32xf32>
      %43 = arith.mulf %40, %42 : vector<16x32xf32>
      %c0_21 = arith.constant 0 : index
      %c0_22 = arith.constant 0 : index
      %44 = vector.load %arg4[%c0_21, %c0_22] : memref<1x32xf32, #tpu.memory_space<vmem>>, vector<1x32xf32>
      %45 = vector.broadcast %44 : vector<1x32xf32> to vector<16x32xf32>
      %46 = arith.addf %43, %45 : vector<16x32xf32>
      %47 = arith.truncf %46 : vector<16x32xf32> to vector<16x32xbf16>
      %c0_23 = arith.constant 0 : index
      %c0_24 = arith.constant 0 : index
      %48 = vector.load %arg8[%c0_23, %c0_24] : memref<16x32xbf16, #tpu.memory_space<vmem>>, vector<16x32xbf16>
      tpu.vector_store %arg8[%c0_23, %c0_24], %47 {strides = array<i32>} : memref<16x32xbf16, #tpu.memory_space<vmem>>, vector<16x32xbf16>,
    } else {
    }
    %c0 = arith.constant 0 : index
    %c0_1 = arith.constant 0 : index
    %3 = vector.load %arg8[%c0, %c0_1] : memref<16x32xbf16, #tpu.memory_space<vmem>>, vector<16x32xbf16>
    %c0_2 = arith.constant 0 : index
    %c0_3 = arith.constant 0 : index
    %4 = vector.load %arg5[%c0_2, %c0_3] : memref<32x128xbf16, #tpu.memory_space<vmem>>, vector<32x128xbf16>
    %cst = arith.constant dense<0.000000e+00> : vector<16x128xf32>
    %5 = tpu.matmul %3, %4, %cst {dimension_numbers = #tpu.dot_dimension_numbers<[1], [0], [0], [1], [0, 0, 1, 1], [], []>} : vector<16x32xbf16>, vector<32x128xbf16>, vector<16x128xf32> -> vector<16x128xf32>
    %c0_4 = arith.constant 0 : index
    %c0_5 = arith.constant 0 : index
    %6 = vector.load %arg6[%c0_4, %c0_5] : memref<1x128xf32, #tpu.memory_space<vmem>>, vector<1x128xf32>
    %7 = vector.broadcast %6 : vector<1x128xf32> to vector<16x128xf32>
    %8 = arith.addf %5, %7 : vector<16x128xf32>
    %cst_6 = arith.constant 5.000000e-01 : f32
    %9 = vector.broadcast %cst_6 : f32 to vector<16x128xf32>
    %10 = arith.mulf %9, %8 : vector<16x128xf32>
    %cst_7 = arith.constant 4.471500e-02 : f32
    %11 = vector.broadcast %cst_7 : f32 to vector<16x128xf32>
    %12 = arith.mulf %11, %8 : vector<16x128xf32>
    %13 = arith.mulf %12, %8 : vector<16x128xf32>
    %14 = arith.mulf %13, %8 : vector<16x128xf32>
    %15 = arith.addf %8, %14 : vector<16x128xf32>
    %cst_8 = arith.constant 0.797884583 : f32
    %16 = vector.broadcast %cst_8 : f32 to vector<16x128xf32>
    %17 = arith.mulf %16, %15 : vector<16x128xf32>
    %18 = math.tanh %17 : vector<16x128xf32>
    %cst_9 = arith.constant 1.000000e+00 : f32
    %19 = vector.broadcast %cst_9 : f32 to vector<16x128xf32>
    %20 = arith.addf %19, %18 : vector<16x128xf32>
    %21 = arith.mulf %10, %20 : vector<16x128xf32>
    %22 = arith.truncf %21 : vector<16x128xf32> to vector<16x128xbf16>
    %c0_10 = arith.constant 0 : index
    %c0_11 = arith.constant 0 : index
    %23 = vector.load %arg7[%c0_10, %c0_11] : memref<16x128xbf16, #tpu.memory_space<vmem>>, vector<16x128xbf16>
    tpu.vector_store %arg7[%c0_10, %c0_11], %22 {strides = array<i32>} : memref<16x128xbf16, #tpu.memory_space<vmem>>, vector<16x128xbf16>,
    return
  }
  func.func @transform_0(%arg0: i32, %arg1: i32) -> (i32, i32) {
    %c0_i32 = arith.constant 0 : i32
    %c0_i32_0 = arith.constant 0 : i32
    return %arg0, %c0_i32 : i32, i32
  }
  func.func @transform_1(%arg0: i32, %arg1: i32) -> (i32, i32) {
    %c0_i32 = arith.constant 0 : i32
    %c0_i32_0 = arith.constant 0 : i32
    %c0_i32_1 = arith.constant 0 : i32
    return %c0_i32, %c0_i32_0 : i32, i32
  }
  func.func @transform_2(%arg0: i32, %arg1: i32) -> (i32, i32) {
    %c0_i32 = arith.constant 0 : i32
    %c0_i32_0 = arith.constant 0 : i32
    %c0_i32_1 = arith.constant 0 : i32
    return %c0_i32, %c0_i32_0 : i32, i32
  }
  func.func @transform_3(%arg0: i32, %arg1: i32) -> (i32, i32) {
    %c0_i32 = arith.constant 0 : i32
    %c0_i32_0 = arith.constant 0 : i32
    return %c0_i32, %arg1 : i32, i32
  }
  func.func @transform_4(%arg0: i32, %arg1: i32) -> (i32, i32) {
    %c0_i32 = arith.constant 0 : i32
    %c0_i32_0 = arith.constant 0 : i32
    return %c0_i32, %arg1 : i32, i32
  }
  func.func @transform_5(%arg0: i32, %arg1: i32) -> (i32, i32) {
    %c0_i32 = arith.constant 0 : i32
    return %arg0, %arg1 : i32, i32
  }
}

module attributes {stable_mosaic.version = 11 : i64} {
  func.func @_dense_acc_kernel(%arg0: i32, %arg1: i32, %arg2: i32, %arg3: memref<16x128xbf16, #tpu.memory_space<vmem>>, %arg4: memref<128x32xbf16, #tpu.memory_space<vmem>>, %arg5: memref<1x32xf32, #tpu.memory_space<vmem>>, %arg6: memref<16x32xf32, #tpu.memory_space<vmem>>, %arg7: memref<16x32xf32, #tpu.memory_space<vmem>>, %arg8: memref<16x32xf32, #tpu.memory_space<vmem>>) attributes {dimension_semantics = [#tpu.dimension_semantics<parallel>, #tpu.dimension_semantics<parallel>, #tpu.dimension_semantics<arbitrary>], iteration_bounds = array<i64: 1, 1, 1>, scalar_prefetch = 0 : i64, scratch_operands = 1 : i64, tpu.core_type = #tpu.core_type<tc>, window_params = [{transform_indices = @transform_0, window_bounds = array<i64: 16, 128>}, {transform_indices = @transform_1, window_bounds = array<i64: 128, 32>}, {transform_indices = @transform_2, window_bounds = array<i64: 1, 32>}, {transform_indices = @transform_3, window_bounds = array<i64: 16, 32>}, {transform_indices = @transform_4, window_bounds = array<i64: 16, 32>}]} {
    %c0_i32 = arith.constant 0 : i32
    %0 = arith.cmpi eq, %arg2, %c0_i32 : i32
    %1 = arith.extui %0 : i1 to i32
    %c0_i32_0 = arith.constant 0 : i32
    %2 = arith.cmpi ne, %1, %c0_i32_0 : i32
    scf.if %2 {
      %cst_10 = arith.constant 0.000000e+00 : f32
      %12 = vector.broadcast %cst_10 : f32 to vector<16x32xf32>
      %c0_11 = arith.constant 0 : index
      %c0_12 = arith.constant 0 : index
      %13 = vector.load %arg8[%c0_11, %c0_12] : memref<16x32xf32, #tpu.memory_space<vmem>>, vector<16x32xf32>
      tpu.vector_store %arg8[%c0_11, %c0_12], %12 {strides = array<i32>} : memref<16x32xf32, #tpu.memory_space<vmem>>, vector<16x32xf32>,
    } else {
    }
    %c0 = arith.constant 0 : index
    %c0_1 = arith.constant 0 : index
    %3 = vector.load %arg8[%c0, %c0_1] : memref<16x32xf32, #tpu.memory_space<vmem>>, vector<16x32xf32>
    %c0_2 = arith.constant 0 : index
    %c0_3 = arith.constant 0 : index
    %4 = vector.load %arg3[%c0_2, %c0_3] : memref<16x128xbf16, #tpu.memory_space<vmem>>, vector<16x128xbf16>
    %c0_4 = arith.constant 0 : index
    %c0_5 = arith.constant 0 : index
    %5 = vector.load %arg4[%c0_4, %c0_5] : memref<128x32xbf16, #tpu.memory_space<vmem>>, vector<128x32xbf16>
    %cst = arith.constant dense<0.000000e+00> : vector<16x32xf32>
    %6 = tpu.matmul %4, %5, %cst {dimension_numbers = #tpu.dot_dimension_numbers<[1], [0], [0], [1], [0, 0, 1, 1], [], []>} : vector<16x128xbf16>, vector<128x32xbf16>, vector<16x32xf32> -> vector<16x32xf32>
    %7 = arith.addf %3, %6 : vector<16x32xf32>
    %c0_6 = arith.constant 0 : index
    %c0_7 = arith.constant 0 : index
    %8 = vector.load %arg8[%c0_6, %c0_7] : memref<16x32xf32, #tpu.memory_space<vmem>>, vector<16x32xf32>
    tpu.vector_store %arg8[%c0_6, %c0_7], %7 {strides = array<i32>} : memref<16x32xf32, #tpu.memory_space<vmem>>, vector<16x32xf32>,
    %c0_i32_8 = arith.constant 0 : i32
    %9 = arith.cmpi eq, %arg2, %c0_i32_8 : i32
    %10 = arith.extui %9 : i1 to i32
    %c0_i32_9 = arith.constant 0 : i32
    %11 = arith.cmpi ne, %10, %c0_i32_9 : i32
    scf.if %11 {
      %c0_10 = arith.constant 0 : index
      %c0_11 = arith.constant 0 : index
      %12 = vector.load %arg8[%c0_10, %c0_11] : memref<16x32xf32, #tpu.memory_space<vmem>>, vector<16x32xf32>
      %c0_12 = arith.constant 0 : index
      %c0_13 = arith.constant 0 : index
      %13 = vector.load %arg5[%c0_12, %c0_13] : memref<1x32xf32, #tpu.memory_space<vmem>>, vector<1x32xf32>
      %14 = vector.broadcast %13 : vector<1x32xf32> to vector<16x32xf32>
      %15 = arith.addf %12, %14 : vector<16x32xf32>
      %c0_14 = arith.constant 0 : index
      %c0_15 = arith.constant 0 : index
      %16 = vector.load %arg6[%c0_14, %c0_15] : memref<16x32xf32, #tpu.memory_space<vmem>>, vector<16x32xf32>
      %17 = arith.addf %15, %16 : vector<16x32xf32>
      %c0_16 = arith.constant 0 : index
      %c0_17 = arith.constant 0 : index
      %18 = vector.load %arg7[%c0_16, %c0_17] : memref<16x32xf32, #tpu.memory_space<vmem>>, vector<16x32xf32>
      tpu.vector_store %arg7[%c0_16, %c0_17], %17 {strides = array<i32>} : memref<16x32xf32, #tpu.memory_space<vmem>>, vector<16x32xf32>,
    } else {
    }
    return
  }
  func.func @transform_0(%arg0: i32, %arg1: i32, %arg2: i32) -> (i32, i32) {
    %c0_i32 = arith.constant 0 : i32
    return %arg0, %arg2 : i32, i32
  }
  func.func @transform_1(%arg0: i32, %arg1: i32, %arg2: i32) -> (i32, i32) {
    %c0_i32 = arith.constant 0 : i32
    return %arg2, %arg1 : i32, i32
  }
  func.func @transform_2(%arg0: i32, %arg1: i32, %arg2: i32) -> (i32, i32) {
    %c0_i32 = arith.constant 0 : i32
    %c0_i32_0 = arith.constant 0 : i32
    return %c0_i32, %arg1 : i32, i32
  }
  func.func @transform_3(%arg0: i32, %arg1: i32, %arg2: i32) -> (i32, i32) {
    %c0_i32 = arith.constant 0 : i32
    return %arg0, %arg1 : i32, i32
  }
  func.func @transform_4(%arg0: i32, %arg1: i32, %arg2: i32) -> (i32, i32) {
    %c0_i32 = arith.constant 0 : i32
    return %arg0, %arg1 : i32, i32
  }
}

module attributes {stable_mosaic.version = 11 : i64} {
  func.func @_layernorm_kernel(%arg0: i32, %arg1: memref<16x32xf32, #tpu.memory_space<vmem>>, %arg2: memref<1x32xf32, #tpu.memory_space<vmem>>, %arg3: memref<1x32xf32, #tpu.memory_space<vmem>>, %arg4: memref<16x32xbf16, #tpu.memory_space<vmem>>) attributes {dimension_semantics = [#tpu.dimension_semantics<parallel>], iteration_bounds = array<i64: 1>, scalar_prefetch = 0 : i64, scratch_operands = 0 : i64, tpu.core_type = #tpu.core_type<tc>, window_params = [{transform_indices = @transform_0, window_bounds = array<i64: 16, 32>}, {pipeline_mode = #tpu.pipeline_mode<synchronous>, transform_indices = @transform_1, window_bounds = array<i64: 1, 32>}, {pipeline_mode = #tpu.pipeline_mode<synchronous>, transform_indices = @transform_2, window_bounds = array<i64: 1, 32>}, {transform_indices = @transform_3, window_bounds = array<i64: 16, 32>}]} {
    %c0 = arith.constant 0 : index
    %c0_0 = arith.constant 0 : index
    %0 = vector.load %arg1[%c0, %c0_0] : memref<16x32xf32, #tpu.memory_space<vmem>>, vector<16x32xf32>
    %cst = arith.constant dense<0.000000e+00> : vector<16xf32>
    %1 = vector.multi_reduction <add>, %0, %cst [1] : vector<16x32xf32> to vector<16xf32>
    %2 = vector.shape_cast %1 : vector<16xf32> to vector<16x1xf32>
    %cst_1 = arith.constant 3.200000e+01 : f32
    %3 = vector.broadcast %cst_1 : f32 to vector<16x1xf32>
    %4 = arith.divf %2, %3 : vector<16x1xf32>
    %5 = vector.broadcast %4 : vector<16x1xf32> to vector<16x32xf32>
    %6 = arith.subf %0, %5 : vector<16x32xf32>
    %7 = arith.mulf %6, %6 : vector<16x32xf32>
    %cst_2 = arith.constant dense<0.000000e+00> : vector<16xf32>
    %8 = vector.multi_reduction <add>, %7, %cst_2 [1] : vector<16x32xf32> to vector<16xf32>
    %9 = vector.shape_cast %8 : vector<16xf32> to vector<16x1xf32>
    %cst_3 = arith.constant 3.200000e+01 : f32
    %10 = vector.broadcast %cst_3 : f32 to vector<16x1xf32>
    %11 = arith.divf %9, %10 : vector<16x1xf32>
    %cst_4 = arith.constant 9.99999974E-6 : f32
    %12 = vector.broadcast %cst_4 : f32 to vector<16x1xf32>
    %13 = arith.addf %11, %12 : vector<16x1xf32>
    %14 = math.rsqrt %13 : vector<16x1xf32>
    %15 = vector.broadcast %14 : vector<16x1xf32> to vector<16x32xf32>
    %16 = arith.mulf %6, %15 : vector<16x32xf32>
    %c0_5 = arith.constant 0 : index
    %c0_6 = arith.constant 0 : index
    %17 = vector.load %arg2[%c0_5, %c0_6] : memref<1x32xf32, #tpu.memory_space<vmem>>, vector<1x32xf32>
    %18 = vector.broadcast %17 : vector<1x32xf32> to vector<16x32xf32>
    %19 = arith.mulf %16, %18 : vector<16x32xf32>
    %c0_7 = arith.constant 0 : index
    %c0_8 = arith.constant 0 : index
    %20 = vector.load %arg3[%c0_7, %c0_8] : memref<1x32xf32, #tpu.memory_space<vmem>>, vector<1x32xf32>
    %21 = vector.broadcast %20 : vector<1x32xf32> to vector<16x32xf32>
    %22 = arith.addf %19, %21 : vector<16x32xf32>
    %23 = arith.truncf %22 : vector<16x32xf32> to vector<16x32xbf16>
    %c0_9 = arith.constant 0 : index
    %c0_10 = arith.constant 0 : index
    %24 = vector.load %arg4[%c0_9, %c0_10] : memref<16x32xbf16, #tpu.memory_space<vmem>>, vector<16x32xbf16>
    tpu.vector_store %arg4[%c0_9, %c0_10], %23 {strides = array<i32>} : memref<16x32xbf16, #tpu.memory_space<vmem>>, vector<16x32xbf16>,
    return
  }
  func.func @transform_0(%arg0: i32) -> (i32, i32) {
    %c0_i32 = arith.constant 0 : i32
    %c0_i32_0 = arith.constant 0 : i32
    return %arg0, %c0_i32 : i32, i32
  }
  func.func @transform_1(%arg0: i32) -> (i32, i32) {
    %c0_i32 = arith.constant 0 : i32
    %c0_i32_0 = arith.constant 0 : i32
    %c0_i32_1 = arith.constant 0 : i32
    return %c0_i32, %c0_i32_0 : i32, i32
  }
  func.func @transform_2(%arg0: i32) -> (i32, i32) {
    %c0_i32 = arith.constant 0 : i32
    %c0_i32_0 = arith.constant 0 : i32
    %c0_i32_1 = arith.constant 0 : i32
    return %c0_i32, %c0_i32_0 : i32, i32
  }
  func.func @transform_3(%arg0: i32) -> (i32, i32) {
    %c0_i32 = arith.constant 0 : i32
    %c0_i32_0 = arith.constant 0 : i32
    return %arg0, %c0_i32 : i32, i32
  }
}

module attributes {stable_mosaic.version = 11 : i64} {
  func.func @_dense_acc_kernel(%arg0: i32, %arg1: i32, %arg2: i32, %arg3: memref<2x256xbf16, #tpu.memory_space<vmem>>, %arg4: memref<256x8xbf16, #tpu.memory_space<vmem>>, %arg5: memref<1x8xf32, #tpu.memory_space<vmem>>, %arg6: memref<2x8xf32, #tpu.memory_space<vmem>>, %arg7: memref<2x8xf32, #tpu.memory_space<vmem>>) attributes {dimension_semantics = [#tpu.dimension_semantics<parallel>, #tpu.dimension_semantics<parallel>, #tpu.dimension_semantics<arbitrary>], iteration_bounds = array<i64: 1, 1, 1>, scalar_prefetch = 0 : i64, scratch_operands = 1 : i64, tpu.core_type = #tpu.core_type<tc>, window_params = [{transform_indices = @transform_0, window_bounds = array<i64: 2, 256>}, {transform_indices = @transform_1, window_bounds = array<i64: 256, 8>}, {transform_indices = @transform_2, window_bounds = array<i64: 1, 8>}, {transform_indices = @transform_3, window_bounds = array<i64: 2, 8>}]} {
    %c0_i32 = arith.constant 0 : i32
    %0 = arith.cmpi eq, %arg2, %c0_i32 : i32
    %1 = arith.extui %0 : i1 to i32
    %c0_i32_0 = arith.constant 0 : i32
    %2 = arith.cmpi ne, %1, %c0_i32_0 : i32
    scf.if %2 {
      %cst_10 = arith.constant 0.000000e+00 : f32
      %12 = vector.broadcast %cst_10 : f32 to vector<2x8xf32>
      %c0_11 = arith.constant 0 : index
      %c0_12 = arith.constant 0 : index
      %13 = vector.load %arg7[%c0_11, %c0_12] : memref<2x8xf32, #tpu.memory_space<vmem>>, vector<2x8xf32>
      tpu.vector_store %arg7[%c0_11, %c0_12], %12 {strides = array<i32>} : memref<2x8xf32, #tpu.memory_space<vmem>>, vector<2x8xf32>,
    } else {
    }
    %c0 = arith.constant 0 : index
    %c0_1 = arith.constant 0 : index
    %3 = vector.load %arg7[%c0, %c0_1] : memref<2x8xf32, #tpu.memory_space<vmem>>, vector<2x8xf32>
    %c0_2 = arith.constant 0 : index
    %c0_3 = arith.constant 0 : index
    %4 = vector.load %arg3[%c0_2, %c0_3] : memref<2x256xbf16, #tpu.memory_space<vmem>>, vector<2x256xbf16>
    %c0_4 = arith.constant 0 : index
    %c0_5 = arith.constant 0 : index
    %5 = vector.load %arg4[%c0_4, %c0_5] : memref<256x8xbf16, #tpu.memory_space<vmem>>, vector<256x8xbf16>
    %cst = arith.constant dense<0.000000e+00> : vector<2x8xf32>
    %6 = tpu.matmul %4, %5, %cst {dimension_numbers = #tpu.dot_dimension_numbers<[1], [0], [0], [1], [0, 0, 1, 1], [], []>} : vector<2x256xbf16>, vector<256x8xbf16>, vector<2x8xf32> -> vector<2x8xf32>
    %7 = arith.addf %3, %6 : vector<2x8xf32>
    %c0_6 = arith.constant 0 : index
    %c0_7 = arith.constant 0 : index
    %8 = vector.load %arg7[%c0_6, %c0_7] : memref<2x8xf32, #tpu.memory_space<vmem>>, vector<2x8xf32>
    tpu.vector_store %arg7[%c0_6, %c0_7], %7 {strides = array<i32>} : memref<2x8xf32, #tpu.memory_space<vmem>>, vector<2x8xf32>,
    %c0_i32_8 = arith.constant 0 : i32
    %9 = arith.cmpi eq, %arg2, %c0_i32_8 : i32
    %10 = arith.extui %9 : i1 to i32
    %c0_i32_9 = arith.constant 0 : i32
    %11 = arith.cmpi ne, %10, %c0_i32_9 : i32
    scf.if %11 {
      %c0_10 = arith.constant 0 : index
      %c0_11 = arith.constant 0 : index
      %12 = vector.load %arg7[%c0_10, %c0_11] : memref<2x8xf32, #tpu.memory_space<vmem>>, vector<2x8xf32>
      %c0_12 = arith.constant 0 : index
      %c0_13 = arith.constant 0 : index
      %13 = vector.load %arg5[%c0_12, %c0_13] : memref<1x8xf32, #tpu.memory_space<vmem>>, vector<1x8xf32>
      %14 = vector.broadcast %13 : vector<1x8xf32> to vector<2x8xf32>
      %15 = arith.addf %12, %14 : vector<2x8xf32>
      %cst_14 = arith.constant 0.000000e+00 : f32
      %16 = vector.broadcast %cst_14 : f32 to vector<2x8xf32>
      %17 = arith.maximumf %15, %16 : vector<2x8xf32>
      %c0_15 = arith.constant 0 : index
      %c0_16 = arith.constant 0 : index
      %18 = vector.load %arg6[%c0_15, %c0_16] : memref<2x8xf32, #tpu.memory_space<vmem>>, vector<2x8xf32>
      tpu.vector_store %arg6[%c0_15, %c0_16], %17 {strides = array<i32>} : memref<2x8xf32, #tpu.memory_space<vmem>>, vector<2x8xf32>,
    } else {
    }
    return
  }
  func.func @transform_0(%arg0: i32, %arg1: i32, %arg2: i32) -> (i32, i32) {
    %c0_i32 = arith.constant 0 : i32
    return %arg0, %arg2 : i32, i32
  }
  func.func @transform_1(%arg0: i32, %arg1: i32, %arg2: i32) -> (i32, i32) {
    %c0_i32 = arith.constant 0 : i32
    return %arg2, %arg1 : i32, i32
  }
  func.func @transform_2(%arg0: i32, %arg1: i32, %arg2: i32) -> (i32, i32) {
    %c0_i32 = arith.constant 0 : i32
    %c0_i32_0 = arith.constant 0 : i32
    return %c0_i32, %arg1 : i32, i32
  }
  func.func @transform_3(%arg0: i32, %arg1: i32, %arg2: i32) -> (i32, i32) {
    %c0_i32 = arith.constant 0 : i32
    return %arg0, %arg1 : i32, i32
  }
}

</mosaic_0001>

<bundles_post_ra>
// kernel: gpt2_classifier_forward.12
= control target key start
LH: loop header
LB: loop body
LE: loop exit
PB: predicated region body
PF: predicated region fallthrough
CT: control target
= control target key end

     0   :  { %vm27_vm0 = vcmask 261120   ;;  %v188_v15 = vmov 0.0   ;;  %vm189_vm1 = vmmov 0   ;;  %vm152_vm2 = vcmask 781312   ;;  %s253_s0 = inlined_call_operand.vmem [shape: f32[16,32], index: 0, kind: input, shape index: {}]   ;;  %s254_s3 = inlined_call_operand.vmem [shape: bf16[32,96], index: 3, kind: input, shape index: {}]   ;;  %s255_s1 = inlined_call_operand.vmem [shape: f32[1,32], index: 1, kind: input, shape index: {}]   ;;  %s256_s2 = inlined_call_operand.vmem [shape: f32[1,32], index: 2, kind: input, shape index: {}]   ;;  %s257_s4 = inlined_call_operand.vmem [shape: f32[1,96], index: 4, kind: input, shape index: {}]   ;;  %s258_s5 = inlined_call_operand.vmem [shape: bf16[16,96], index: 5, kind: output, shape index: {}]  }
   0x1   :  { %v25_v0 = vld [vmem:[%s253_s0] sm:$0xff]  ;;  %v26_v1 = vld [vmem:[%s253_s0 + $0x8] sm:$0xff]  ;;  %172 = vmatprep.subr.bf16.mxu0 %v188_v15  ;;  %176 = vmatprep.mubr.msk.bf16.mxu0 %vm189_vm1, %v188_v15 }
   0x2   :  { %v28_v2 = vsel %vm27_vm0, %v25_v0, 0.0  ;;  %v31_v3 = vsel %vm27_vm0, %v26_v1, 0.0  ;;  %v182_v14 = vld [vmem:[%s254_s3] sm:$0xff]   ;;  %v183_v16 = vld [vmem:[%s254_s3 + $0x8] sm:$0xff]  }
   0x3   :  { %29 = vadd.xlane.f32.xlu0 %v28_v2  ;;  %173 = vmatpush3.bf16.msra.mxu0 %v182_v14  ;;  %v159_v25 = vld [vmem:[%s255_s1] ss:$0 sm:$0xff] }
   0x4   :  { %174 = vmatprep.subr.bf16.mxu0 %v188_v15  ;;  %v160_v29 = vld [vmem:[%s256_s2] ss:$0 sm:$0xff] }
   0x5   :  { %v161_v35 = vld [vmem:[%s257_s4] ss:$0 sm:$0xff] }
   0x7   :  { %32 = vadd.xlane.f32.xlu0 %v31_v3  ;;  %175 = vmatpush3.bf16.msra.mxu0 %v183_v16 }
  0x90   :  { %v30_v4 = vpop.xlane.xlu0 %29 }
  0x91   :  { %v35_v5 = vmul.f32 0.03125, %v30_v4 }
  0x93   :  { %v37_v6 = vsub.f32 %v25_v0, %v35_v5 }
  0x94   :  { %v33_v7 = vpop.xlane.xlu0 %32 }
  0x95   :  { %v36_v8 = vmul.f32 0.03125, %v33_v7  ;;  %v39_v9 = vmul.f32 %v37_v6, %v37_v6 }
  0x97   :  { %v38_v10 = vsub.f32 %v26_v1, %v36_v8  ;;  %v41_v11 = vsel %vm27_vm0, %v39_v9, 0.0 }
  0x98   :  { %42 = vadd.xlane.f32.xlu1 %v41_v11 }
  0x99   :  { %v40_v12 = vmul.f32 %v38_v10, %v38_v10 }
  0x9b   :  { %v44_v13 = vsel %vm27_vm0, %v40_v12, 0.0 }
  0x9c   :  { %45 = vadd.xlane.f32.xlu1 %v44_v13 }
 0x125   :  { %v43_v17 = vpop.xlane.xlu1 %42 }
 0x126   :  { %v47_v18 = vmul.f32 0.03125, %v43_v17 }
 0x128   :  { %v49_v19 = vadd.f32 1e-05, %v47_v18 }
 0x129   :  { %v46_v20 = vpop.xlane.xlu1 %45 }
 0x12a   :  { %184 = vrsqrt.f32 %v49_v19  ;;  %v48_v21 = vmul.f32 0.03125, %v46_v20 }
 0x12c   :  { %v50_v22 = vadd.f32 1e-05, %v48_v21 }
 0x12e   :  { %186 = vrsqrt.f32 %v50_v22 }
 0x134   :  { %v185_v23 = vpop.eup %184 }
 0x135   :  { %v53_v24 = vmul.f32 %v185_v23, %v37_v6 }
 0x137   :  { %v62_v27 = vmul.f32 %v159_v25, %v53_v24 }
 0x138   :  { %v187_v26 = vpop.eup %186 }
 0x139   :  { %v54_v28 = vmul.f32 %v187_v26, %v38_v10  ;;  %v71_v31 = vadd.f32 %v160_v29, %v62_v27 }
 0x13b   :  { %v63_v30 = vmul.f32 %v159_v25, %v54_v28 }
 0x13d   :  { %v72_v32 = vadd.f32 %v160_v29, %v63_v30 }
 0x13f   :  { %v73_v33 = vpack.c.bf16 %v72_v32, %v71_v31 }
 0x141   :  { %74 = vst.msk [vmem:[#allocation2] sm:$0xff] %vm27_vm0, %v73_v33 }
 0x148   :  { %v75_v34 = vld [vmem:[#allocation2] sm:$0xff] }
 0x149   :  { %177 = vmatmul.mubr.msk.bf16.vlgmr.msra.gmra.mrb[0].mxu0 %vm27_vm0, %v75_v34 }
 0x21c   :  { %v137_v36 = vpop.f32.mrb[0].mxu0 }
 0x21d   :  { %v138_v37 = vadd.f32 %v161_v35, %v137_v36  ;;  %v178_v38 = vpop.f32.mrb[1].mxu0 }
 0x21e   :  { %v140_v39 = vpop.f32.mrb[2].mxu0 }
 0x21f   :  { %v167_v40 = vpack.c.bf16 %v138_v37, %v138_v37  ;;  %v141_v41 = vadd.f32 %v161_v35, %v140_v39  ;;  %v179_v42 = vpop.f32.mrb[3].mxu0 }
 0x221   :  { %153 = vst.msk [vmem:[%s258_s5] sm:$0xf] %vm152_vm2, %v167_v40  ;;  %v168_v43 = vpack.c.bf16 %v141_v41, %v141_v41 }
 0x223   :  { %154 = vst.msk [vmem:[%s258_s5 + $0x4] sm:$0xf] %vm152_vm2, %v168_v43 }

// kernel: gpt2_classifier_forward.14
= control target key start
LH: loop header
LB: loop body
LE: loop exit
PB: predicated region body
PF: predicated region fallthrough
CT: control target
= control target key end

     0   :  { %vm22_vm0 = vcmask 261120   ;;  %v144_v0 = vmov 0.0   ;;  %vm145_vm1 = vmmov 0   ;;  %s202_s1 = inlined_call_operand.vmem [shape: bf16[32,32], index: 1, kind: input, shape index: {}]   ;;  %s203_s0 = inlined_call_operand.vmem [shape: bf16[16,32], index: 0, kind: input, shape index: {}]   ;;  %s204_s2 = inlined_call_operand.vmem [shape: f32[1,32], index: 2, kind: input, shape index: {}]   ;;  %s205_s3 = inlined_call_operand.vmem [shape: f32[16,32], index: 3, kind: input, shape index: {}]   ;;  %s206_s4 = inlined_call_operand.vmem [shape: f32[16,32], index: 4, kind: output, shape index: {}]  }
   0x1   :  { %131 = vmatprep.subr.bf16.mxu0 %v144_v0  ;;  %v141_v1 = vld [vmem:[%s202_s1] sm:$0xff]   ;;  %135 = vmatprep.mubr.msk.bf16.mxu0 %vm145_vm1, %v144_v0  ;;  %23 = vst.msk [vmem:[#allocation2] sm:$0xff] %vm22_vm0, %v144_v0  ;;  %24 = vst.msk [vmem:[#allocation2 + $0x8] sm:$0xff] %vm22_vm0, %v144_v0  ;;  %v142_v2 = vld [vmem:[%s202_s1 + $0x8] sm:$0xff]  }
   0x2   :  { %132 = vmatpush3.bf16.msra.mxu0 %v141_v1  ;;  %v143_v3 = vld [vmem:[%s203_s0] sm:$0xff]   ;;  %v114_v17 = vld [vmem:[%s205_s3 + $0x8] sm:$0xff] }
   0x3   :  { %133 = vmatprep.subr.bf16.mxu0 %v144_v0  ;;  %v127_v12 = vld [vmem:[%s204_s2] ss:$0 sm:$0xff] }
   0x4   :  { %v113_v14 = vld [vmem:[%s205_s3] sm:$0xff] }
   0x6   :  { %134 = vmatpush3.bf16.msra.mxu0 %v142_v2 }
   0x8   :  { %v25_v4 = vld [vmem:[#allocation2] sm:$0xff]  ;;  %v26_v6 = vld [vmem:[#allocation2 + $0x8] sm:$0xff] }
   0x9   :  { %136 = vmatmul.mubr.msk.bf16.vlgmr.msra.gmra.mrb[0].mxu0 %vm22_vm0, %v143_v3 }
  0xdc   :  { %v88_v5 = vpop.f32.mrb[0].mxu0 }
  0xdd   :  { %v95_v7 = vadd.f32 %v88_v5, %v25_v4  ;;  %v137_v8 = vpop.f32.mrb[1].mxu0 }
  0xde   :  { %v91_v9 = vpop.f32.mrb[2].mxu0 }
  0xdf   :  { %97 = vst.msk [vmem:[#allocation2] sm:$0xff] %vm22_vm0, %v95_v7  ;;  %v96_v10 = vadd.f32 %v91_v9, %v26_v6  ;;  %v138_v11 = vpop.f32.mrb[3].mxu0 }
  0xe1   :  { %98 = vst.msk [vmem:[#allocation2 + $0x8] sm:$0xff] %vm22_vm0, %v96_v10 }
  0xe6   :  { %v102_v13 = vld [vmem:[#allocation2] sm:$0xff] }
  0xe7   :  { %v111_v15 = vadd.f32 %v127_v12, %v102_v13 }
  0xe8   :  { %v103_v16 = vld [vmem:[#allocation2 + $0x8] sm:$0xff] }
  0xe9   :  { %v115_v18 = vadd.f32 %v113_v14, %v111_v15  ;;  %v112_v19 = vadd.f32 %v127_v12, %v103_v16 }
  0xeb   :  { %117 = vst.msk [vmem:[%s206_s4] sm:$0xff] %vm22_vm0, %v115_v18  ;;  %v116_v20 = vadd.f32 %v114_v17, %v112_v19 }
  0xed   :  { %118 = vst.msk [vmem:[%s206_s4 + $0x8] sm:$0xff] %vm22_vm0, %v116_v20 }

// kernel: gpt2_classifier_forward.13
= control target key start
LH: loop header
LB: loop body
LE: loop exit
PB: predicated region body
PF: predicated region fallthrough
CT: control target
= control target key end

     0   :  { %s867_s9 = smov 0   ;;  %s966_s0 = inlined_call_operand.vmem [shape: bf16[2,8,96], index: 0, kind: input, shape index: {}]   ;;  %s967_s1 = inlined_call_operand.vmem [shape: f32[2,1,8], index: 1, kind: input, shape index: {}]   ;;  %s968_s2 = inlined_call_operand.vmem [shape: bf16[2,8,32], index: 2, kind: output, shape index: {}]  }
   0x1 LB: > { %s702_s10 = sadd.s32 4294967295, %s833_s9   ;;  %p706_p0 = scmp.ge.s32.totalorder %s833_s9, 1  ;;  %s833_s9 = sphi %s867_s9, %s12_s9  }
   0x2   : > { %p119_p1 = scmp.lt.s32.totalorder %s833_s9, 3 }
   0x4   : > { %p120_p2 = pnand %p706_p0, %p119_p1 }
   0x5   : > { %p142_p3 = scmp.lt.s32.totalorder (!%p120_p2), %s702_s10, 1  ;;  %v835_v0 = vmov (!%p120_p2), 0.0   ;;  %vm836_vm0 = vmmov (!%p120_p2), 0   ;;  %s837_s15 = smov (!%p120_p2), 96   ;;  %vm174_vm1 = vcmask (!%p120_p2), 64512   ;;  %v154_v5 = vlaneseq (!%p120_p2) }
   0x6   : > { %123 = sbr.rel (%p120_p2) target bundleno = 1606 (0x646), region = 28  ;;  %737 = vmatprep.subr.bf16.mxu0 (!%p120_p2), %v835_v0  ;;  %739 = vmatprep.mubr.msk.bf16.mxu0 (!%p120_p2), %vm836_vm0, %v835_v0  ;;  %s838_s16 = smov (!%p120_p2), 64   ;;  %v840_v8 = vmov (!%p120_p2), -1e+09   ;;  %vm240_vm3 = vcmask (!%p120_p2), 1043456   ;;  %vm633_vm4 = vcmask (!%p120_p2), 130048  }
   0x7   : > { %743 = vmatprep.subr.bf16.mxu1 (!%p120_p2), %v835_v0  ;;  %745 = vmatprep.mubr.msk.bf16.mxu1 (!%p120_p2), %vm836_vm0, %v835_v0  ;;  %s839_s17 = smov (!%p120_p2), 88   ;;  %v155_v6 = vshrl.u32 (!%p120_p2), %v154_v5, 7  ;;  %v157_v7 = vand.u32 (!%p120_p2), 127, %v154_v5  ;;  %s841_s21 = smov (!%p120_p2), 72   ;;  %vm635_vm5 = vcmask (!%p120_p2), 195584   ;;  %vm638_vm6 = vcmask (!%p120_p2), 257024  }
   0x8   : > { %s842_s22 = smov (!%p120_p2), 120   ;;  %s843_s23 = smov (!%p120_p2), 80  }
   0x9   : > { %vm158_vm2 = vcmp.le.s32.totalorder (!%p120_p2), %v157_v7, %v155_v6  ;;  %s844_s24 = smov (!%p120_p2), 112   ;;  %s845_s25 = smov (!%p120_p2), 104  }
   0xa   : > { %v159_v9 = vsel (!%p120_p2), %vm158_vm2, 0.0, %v840_v8  ;;  %s846_s26 = smov (!%p120_p2), 56   ;;  %s847_s27 = smov (!%p120_p2), 48  }
   0xb   : > { %s848_s28 = smov (!%p120_p2), 40   ;;  %s849_s29 = smov (!%p120_p2), 8  }
   0xc   : > { %s850_s30 = smov (!%p120_p2), 16   ;;  %s851_s3 = smov (!%p120_p2), 24  }
   0xd   : > { %s970_s10 = smov (!%p142_p3, %s702_s10), 1 }
   0xe   : > { %s707_s11 = sshll.u32 %s970_s10, 2  ;;  %s148_s20 = scalar_lea.vmem %s967_s1, %s970_s10 }
   0xf   : > { %s145_s14 = scalar_lea.vmem %s966_s0, %s707_s11  ;;  %v709_v10 = vld [vmem:[%s148_s20] ss:$0 sm:$0xff]  ;;  %s152_s6 = scalar_lea.vmem %s968_s2, %s707_s11 }
  0x10   : > { %v168_v1 = vld [vmem:[%s145_s14] sm:$0xf]  ;;  %v903_v11 = vadd.f32 %v709_v10, %v159_v9 }
  0x11   : > { %v889_v2 = vcombine.low %v168_v1, %v168_v1 }
  0x13   : > { %172 = vrot.lane.b32.xlu0 %v889_v2, %s837_s15  ;;  %235 = vrot.lane.b32.xlu1 %v889_v2, %s838_s16 }
  0x17   : > { %286 = vrot.lane.b32.xlu1 %v889_v2, %s839_s17 }
  0x85   : > { %v173_v3 = vpop.permute.xlu0 %172  ;;  %v236_v19 = vpop.permute.xlu1 %235 }
  0x86   : > { %v179_v4 = vsel %vm174_vm1, %v173_v3, 0  ;;  %v242_v20 = vsel %vm240_vm3, %v236_v19, 0 }
  0x87   : > { %738 = vmatpush3.bf16.xpose.msra.mxu0 %v179_v4  ;;  %744 = vmatpush3.bf16.msra.mxu1 %v242_v20 }
  0x88   : > { %755 = vmatprep.subr.bf16.mxu0 %v835_v0  ;;  %749 = vmatprep.subr.bf16.mxu1 %v835_v0 }
  0x89   : > { %v287_v26 = vpop.permute.xlu1 %286 }
  0x8a   : > { %v292_v32 = vsel %vm174_vm1, %v287_v26, 0 }
  0x8e   : > { %740 = vmatmul.mubr.msk.bf16.vlgmr.msra.gmra.mrb[0].mxu0 %vm174_vm1, %v168_v1 }
  0x8f   : > { %757 = vmatprep.mubr.msk.bf16.mxu0 %vm836_vm0, %v835_v0 }
 0x161   : > { %v215_v12 = vpop.f32.mrb[0].mxu0 }
 0x162   : > { %v221_v13 = vmul.f32 0.35355338, %v215_v12  ;;  %v741_v14 = vpop.f32.mrb[1].mxu0 }
 0x163   : > { %v218_v15 = vpop.f32.mrb[2].mxu0 }
 0x164   : > { %v742_v16 = vpop.f32.mrb[3].mxu0  ;;  %v222_v17 = vadd.f32 %v221_v13, %v903_v11 }
 0x166   : > { %v223_v18 = vsel %vm174_vm1, %v222_v17, -inf }
 0x167   : > { %224 = vmax.xlane.f32.xlu0 %v223_v18 }
 0x17d   : > { %510 = vrot.lane.b32.xlu0 %v889_v2, %s841_s21 }
 0x1f4   : > { %v225_v21 = vpop.xlane.xlu0 %224 }
 0x1f5   : > { %v226_v22 = vsub.f32 %v222_v17, %v225_v21 }
 0x1f7   : > { %v227_v23 = vmul.f32 1.442695, %v226_v22 }
 0x1f8   : > { %v511_v35 = vpop.permute.xlu0 %510 }
 0x1f9   : > { %811 = vpow2.f32 %v227_v23  ;;  %v516_v37 = vsel %vm174_vm1, %v511_v35, 0 }
 0x203   : > { %v812_v24 = vpop.eup %811 }
 0x204   : > { %v229_v25 = vsel %vm174_vm1, %v812_v24, 0.0 }
 0x205   : > { %230 = vadd.xlane.f32.xlu1 %v229_v25 }
 0x216   : > { %284 = vrot.lane.b32.xlu1 %v889_v2, %s842_s22 }
 0x21a   : > { %398 = vrot.lane.b32.xlu1 %v889_v2, %s843_s23 }
 0x21e   : > { %396 = vrot.lane.b32.xlu1 %v889_v2, %s844_s24 }
 0x222   : > { %508 = vrot.lane.b32.xlu1 %v889_v2, %s845_s25 }
 0x292   : > { %v231_v27 = vpop.xlane.xlu1 %230 }
 0x293   : > { %813 = vrcp.f32 %v231_v27 }
 0x296   : > { %v285_v30 = vpop.permute.xlu1 %284 }
 0x29a   : > { %v399_v33 = vpop.permute.xlu1 %398 }
 0x29b   : > { %v404_v34 = vsel %vm174_vm1, %v399_v33, 0 }
 0x29d   : > { %v814_v28 = vpop.eup %813 }
 0x29e   : > { %v233_v29 = vmul.f32 %v814_v28, %v812_v24  ;;  %v397_v36 = vpop.permute.xlu1 %396 }
 0x2a0   : > { %v234_v31 = vpack.c.bf16 %v233_v29, %v233_v29 }
 0x2a2   : > { %746 = vmatmul.mubr.msk.bf16.vlgmr.msra.gmra.mrb[0].mxu1 %vm174_vm1, %v234_v31  ;;  %v509_v38 = vpop.permute.xlu1 %508 }
 0x2a3   : > { %750 = vmatpush3.bf16.xpose.msra.mxu1 %v292_v32  ;;  %751 = vmatprep.mubr.msk.bf16.mxu1 %vm836_vm0, %v835_v0 }
 0x2a4   : > { %761 = vmatprep.subr.bf16.mxu1 %v835_v0 }
 0x2aa   : > { %752 = vmatmul.mubr.msk.bf16.vlgmr.msra.gmra.mrb[4].mxu1 %vm174_vm1, %v285_v30 }
 0x2ab   : > { %762 = vmatpush3.bf16.xpose.msra.mxu1 %v404_v34  ;;  %763 = vmatprep.mubr.msk.bf16.mxu1 %vm836_vm0, %v835_v0 }
 0x2ac   : > { %773 = vmatprep.subr.bf16.mxu1 %v835_v0 }
 0x2b2   : > { %764 = vmatmul.mubr.msk.bf16.vlgmr.msra.gmra.mrb[8].mxu1 %vm174_vm1, %v397_v36 }
 0x2b3   : > { %774 = vmatpush3.bf16.xpose.msra.mxu1 %v516_v37  ;;  %775 = vmatprep.mubr.msk.bf16.mxu1 %vm836_vm0, %v835_v0 }
 0x2ba   : > { %776 = vmatmul.mubr.msk.bf16.vlgmr.msra.gmra.mrb[12].mxu1 %vm174_vm1, %v509_v38 }
 0x375   : > { %v930_v39 = vpop.f32.mrb[0].mxu1 }
 0x376   : > { %v747_v40 = vpop.f32.mrb[1].mxu1 }
 0x377   : > { %v281_v41 = vpop.f32.mrb[2].mxu1 }
 0x378   : > { %v748_v42 = vpop.f32.mrb[3].mxu1 }
 0x37d   : > { %v328_v43 = vpop.f32.mrb[4].mxu1 }
 0x37e   : > { %v334_v44 = vmul.f32 0.35355338, %v328_v43  ;;  %v753_v45 = vpop.f32.mrb[5].mxu1 }
 0x37f   : > { %v331_v46 = vpop.f32.mrb[6].mxu1 }
 0x380   : > { %v754_v47 = vpop.f32.mrb[7].mxu1  ;;  %v335_v48 = vadd.f32 %v334_v44, %v903_v11 }
 0x382   : > { %v336_v49 = vsel %vm174_vm1, %v335_v48, -inf }
 0x383   : > { %337 = vmax.xlane.f32.xlu1 %v336_v49 }
 0x385   : > { %v440_v50 = vpop.f32.mrb[8].mxu1 }
 0x386   : > { %v446_v51 = vmul.f32 0.35355338, %v440_v50  ;;  %v765_v52 = vpop.f32.mrb[9].mxu1 }
 0x387   : > { %v443_v53 = vpop.f32.mrb[10].mxu1 }
 0x388   : > { %v447_v54 = vadd.f32 %v446_v51, %v903_v11  ;;  %v766_v55 = vpop.f32.mrb[11].mxu1 }
 0x38a   : > { %v448_v56 = vsel %vm174_vm1, %v447_v54, -inf }
 0x38b   : > { %449 = vmax.xlane.f32.xlu0 %v448_v56 }
 0x38d   : > { %v552_v57 = vpop.f32.mrb[12].mxu1 }
 0x38e   : > { %v558_v58 = vmul.f32 0.35355338, %v552_v57  ;;  %v777_v59 = vpop.f32.mrb[13].mxu1 }
 0x38f   : > { %v555_v60 = vpop.f32.mrb[14].mxu1 }
 0x390   : > { %v559_v61 = vadd.f32 %v558_v58, %v903_v11  ;;  %v778_v62 = vpop.f32.mrb[15].mxu1 }
 0x392   : > { %v560_v63 = vsel %vm174_vm1, %v559_v61, -inf }
 0x393   : > { %561 = vmax.xlane.f32.xlu1 %v560_v63 }
 0x410   : > { %v338_v1 = vpop.xlane.xlu1 %337 }
 0x411   : > { %v339_v3 = vsub.f32 %v335_v48, %v338_v1 }
 0x413   : > { %v340_v4 = vmul.f32 1.442695, %v339_v3 }
 0x415   : > { %815 = vpow2.f32 %v340_v4 }
 0x418   : > { %v450_v11 = vpop.xlane.xlu0 %449 }
 0x419   : > { %v451_v13 = vsub.f32 %v447_v54, %v450_v11 }
 0x41b   : > { %v452_v14 = vmul.f32 1.442695, %v451_v13 }
 0x41f   : > { %v816_v5 = vpop.eup %815 }
 0x420   : > { %v562_v6 = vpop.xlane.xlu1 %561  ;;  %v342_v7 = vsel %vm174_vm1, %v816_v5, 0.0 }
 0x421   : > { %v563_v8 = vsub.f32 %v559_v61, %v562_v6  ;;  %343 = vadd.xlane.f32.xlu1 %v342_v7 }
 0x423   : > { %v564_v9 = vmul.f32 1.442695, %v563_v8 }
 0x425   : > { %817 = vpow2.f32 %v564_v9 }
 0x426   : > { %819 = vpow2.f32 %v452_v14 }
 0x42f   : > { %v818_v10 = vpop.eup %817 }
 0x430   : > { %v566_v12 = vsel %vm174_vm1, %v818_v10, 0.0  ;;  %v820_v15 = vpop.eup %819 }
 0x431   : > { %567 = vadd.xlane.f32.xlu0 %v566_v12  ;;  %v454_v16 = vsel %vm174_vm1, %v820_v15, 0.0 }
 0x432   : > { %348 = vrot.lane.b32.xlu1 %v889_v2, %s846_s26 }
 0x447   : > { %460 = vrot.lane.b32.xlu0 %v889_v2, %s847_s27 }
 0x456   : > { %455 = vadd.xlane.f32.xlu1 %v454_v16 }
 0x467   : > { %572 = vrot.lane.b32.xlu1 %v889_v2, %s848_s28 }
 0x4ae   : > { %v344_v17 = vpop.xlane.xlu1 %343 }
 0x4af   : > { %821 = vrcp.f32 %v344_v17 }
 0x4b2   : > { %v349_v18 = vpop.permute.xlu1 %348 }
 0x4b3   : > { %v354_v19 = vsel %vm240_vm3, %v349_v18, 0 }
 0x4b4   : > { %756 = vmatpush3.bf16.msra.mxu0 %v354_v19 }
 0x4b5   : > { %767 = vmatprep.subr.bf16.mxu0 %v835_v0 }
 0x4b9   : > { %v822_v20 = vpop.eup %821 }
 0x4ba   : > { %v346_v21 = vmul.f32 %v822_v20, %v816_v5 }
 0x4bc   : > { %v347_v22 = vpack.c.bf16 %v346_v21, %v346_v21 }
 0x4be   : > { %758 = vmatmul.mubr.msk.bf16.vlgmr.msra.gmra.mrb[4].mxu0 %vm174_vm1, %v347_v22  ;;  %v568_v23 = vpop.xlane.xlu0 %567 }
 0x4bf   : > { %769 = vmatprep.mubr.msk.bf16.mxu0 %vm836_vm0, %v835_v0 }
 0x4c2   : > { %v461_v24 = vpop.permute.xlu0 %460 }
 0x4c3   : > { %v466_v2 = vsel %vm240_vm3, %v461_v24, 0 }
 0x4c4   : > { %768 = vmatpush3.bf16.msra.mxu0 %v466_v2 }
 0x4c5   : > { %779 = vmatprep.subr.bf16.mxu0 %v835_v0 }
 0x4e3   : > { %v456_v25 = vpop.xlane.xlu1 %455 }
 0x4e4   : > { %823 = vrcp.f32 %v456_v25 }
 0x4e5   : > { %825 = vrcp.f32 %v568_v23 }
 0x4e7   : > { %v573_v27 = vpop.permute.xlu1 %572 }
 0x4e8   : > { %v578_v29 = vsel %vm240_vm3, %v573_v27, 0 }
 0x4ee   : > { %v824_v26 = vpop.eup %823 }
 0x4ef   : > { %v458_v28 = vmul.f32 %v824_v26, %v820_v15  ;;  %v826_v31 = vpop.eup %825 }
 0x4f0   : > { %v570_v32 = vmul.f32 %v826_v31, %v818_v10 }
 0x4f1   : > { %v459_v30 = vpack.c.bf16 %v458_v28, %v458_v28 }
 0x4f2   : > { %v571_v33 = vpack.c.bf16 %v570_v32, %v570_v32 }
 0x4f3   : > { %770 = vmatmul.mubr.msk.bf16.vlgmr.msra.gmra.mrb[8].mxu0 %vm174_vm1, %v459_v30 }
 0x4f4   : > { %780 = vmatpush3.bf16.msra.mxu0 %v578_v29  ;;  %781 = vmatprep.mubr.msk.bf16.mxu0 %vm836_vm0, %v835_v0 }
 0x4fb   : > { %782 = vmatmul.mubr.msk.bf16.vlgmr.msra.gmra.mrb[12].mxu0 %vm174_vm1, %v571_v33 }
 0x591   : > { %v390_v34 = vpop.f32.mrb[4].mxu0 }
 0x592   : > { %621 = vrot.lane.b32.xlu1 %v390_v34, %s849_s29  ;;  %v759_v35 = vpop.f32.mrb[5].mxu0 }
 0x593   : > { %v393_v36 = vpop.f32.mrb[6].mxu0 }
 0x594   : > { %v760_v37 = vpop.f32.mrb[7].mxu0 }
 0x5c6   : > { %v502_v38 = vpop.f32.mrb[8].mxu0 }
 0x5c7   : > { %625 = vrot.lane.b32.xlu0 %v502_v38, %s850_s30  ;;  %v771_v40 = vpop.f32.mrb[9].mxu0 }
 0x5c8   : > { %v505_v41 = vpop.f32.mrb[10].mxu0 }
 0x5c9   : > { %v772_v42 = vpop.f32.mrb[11].mxu0 }
 0x5ce   : > { %v614_v43 = vpop.f32.mrb[12].mxu0 }
 0x5cf   : > { %629 = vrot.lane.b32.xlu1 %v614_v43, %s851_s3  ;;  %v783_v0 = vpop.f32.mrb[13].mxu0 }
 0x5d0   : > { %v617_v44 = vpop.f32.mrb[14].mxu0 }
 0x5d1   : > { %v784_v45 = vpop.f32.mrb[15].mxu0 }
 0x604   : > { %v622_v46 = vpop.permute.xlu1 %621 }
 0x605   : > { %v632_v48 = vsel %vm174_vm1, %v930_v39, %v622_v46 }
 0x639   : > { %v626_v47 = vpop.permute.xlu0 %625 }
 0x63a   : > { %v634_v49 = vsel %vm633_vm4, %v632_v48, %v626_v47 }
 0x641   : > { %v630_v50 = vpop.permute.xlu1 %629 }
 0x642   : > { %v636_v51 = vsel %vm635_vm5, %v634_v49, %v630_v50 }
 0x643   : > { %v637_v52 = vpack.c.bf16 %v636_v51, %v636_v51 }
 0x645   : > { %639 = vst.msk [vmem:[%s152_s6] sm:$0xf] %vm638_vm6, %v637_v52 }
 0x646 PF: > { %s12_s9 = sadd.s32 1, %s833_s9  }
 0x647   : > { %p9_p4 = scmp.ge.s32.totalorder %s12_s9, 4  }
 0x649   :  { %11 = sbr.rel (!%p9_p4) target bundleno = 1 (0x1), region = 61 }

// kernel: gpt2_classifier_forward.15
= control target key start
LH: loop header
LB: loop body
LE: loop exit
PB: predicated region body
PF: predicated region fallthrough
CT: control target
= control target key end

     0   :  { %vm27_vm0 = vcmask 261120   ;;  %v214_v15 = vmov 0.0   ;;  %vm215_vm1 = vmmov 0   ;;  %s276_s0 = inlined_call_operand.vmem [shape: f32[16,32], index: 0, kind: input, shape index: {}]   ;;  %s277_s3 = inlined_call_operand.vmem [shape: bf16[32,128], index: 3, kind: input, shape index: {}]   ;;  %s278_s1 = inlined_call_operand.vmem [shape: f32[1,32], index: 1, kind: input, shape index: {}]   ;;  %s279_s2 = inlined_call_operand.vmem [shape: f32[1,32], index: 2, kind: input, shape index: {}]   ;;  %s280_s4 = inlined_call_operand.vmem [shape: f32[1,128], index: 4, kind: input, shape index: {}]   ;;  %s281_s5 = inlined_call_operand.vmem [shape: bf16[16,128], index: 5, kind: output, shape index: {}]  }
   0x1   :  { %v25_v0 = vld [vmem:[%s276_s0] sm:$0xff]  ;;  %v26_v1 = vld [vmem:[%s276_s0 + $0x8] sm:$0xff]  ;;  %194 = vmatprep.subr.bf16.mxu0 %v214_v15  ;;  %198 = vmatprep.mubr.msk.bf16.mxu0 %vm215_vm1, %v214_v15 }
   0x2   :  { %v28_v2 = vsel %vm27_vm0, %v25_v0, 0.0  ;;  %v31_v3 = vsel %vm27_vm0, %v26_v1, 0.0  ;;  %v204_v14 = vld [vmem:[%s277_s3] sm:$0xff]   ;;  %v205_v16 = vld [vmem:[%s277_s3 + $0x8] sm:$0xff]  }
   0x3   :  { %29 = vadd.xlane.f32.xlu0 %v28_v2  ;;  %195 = vmatpush3.bf16.msra.mxu0 %v204_v14  ;;  %v176_v25 = vld [vmem:[%s278_s1] ss:$0 sm:$0xff] }
   0x4   :  { %196 = vmatprep.subr.bf16.mxu0 %v214_v15  ;;  %v177_v29 = vld [vmem:[%s279_s2] ss:$0 sm:$0xff] }
   0x5   :  { %v178_v35 = vld [vmem:[%s280_s4] ss:$0 sm:$0xff] }
   0x7   :  { %32 = vadd.xlane.f32.xlu0 %v31_v3  ;;  %197 = vmatpush3.bf16.msra.mxu0 %v205_v16 }
  0x90   :  { %v30_v4 = vpop.xlane.xlu0 %29 }
  0x91   :  { %v35_v5 = vmul.f32 0.03125, %v30_v4 }
  0x93   :  { %v37_v6 = vsub.f32 %v25_v0, %v35_v5 }
  0x94   :  { %v33_v7 = vpop.xlane.xlu0 %32 }
  0x95   :  { %v36_v8 = vmul.f32 0.03125, %v33_v7  ;;  %v39_v9 = vmul.f32 %v37_v6, %v37_v6 }
  0x97   :  { %v38_v10 = vsub.f32 %v26_v1, %v36_v8  ;;  %v41_v11 = vsel %vm27_vm0, %v39_v9, 0.0 }
  0x98   :  { %42 = vadd.xlane.f32.xlu1 %v41_v11 }
  0x99   :  { %v40_v12 = vmul.f32 %v38_v10, %v38_v10 }
  0x9b   :  { %v44_v13 = vsel %vm27_vm0, %v40_v12, 0.0 }
  0x9c   :  { %45 = vadd.xlane.f32.xlu1 %v44_v13 }
 0x125   :  { %v43_v17 = vpop.xlane.xlu1 %42 }
 0x126   :  { %v47_v18 = vmul.f32 0.03125, %v43_v17 }
 0x128   :  { %v49_v19 = vadd.f32 1e-05, %v47_v18 }
 0x129   :  { %v46_v20 = vpop.xlane.xlu1 %45 }
 0x12a   :  { %206 = vrsqrt.f32 %v49_v19  ;;  %v48_v21 = vmul.f32 0.03125, %v46_v20 }
 0x12c   :  { %v50_v22 = vadd.f32 1e-05, %v48_v21 }
 0x12e   :  { %208 = vrsqrt.f32 %v50_v22 }
 0x134   :  { %v207_v23 = vpop.eup %206 }
 0x135   :  { %v53_v24 = vmul.f32 %v207_v23, %v37_v6 }
 0x137   :  { %v62_v27 = vmul.f32 %v176_v25, %v53_v24 }
 0x138   :  { %v209_v26 = vpop.eup %208 }
 0x139   :  { %v54_v28 = vmul.f32 %v209_v26, %v38_v10  ;;  %v71_v31 = vadd.f32 %v177_v29, %v62_v27 }
 0x13b   :  { %v63_v30 = vmul.f32 %v176_v25, %v54_v28 }
 0x13d   :  { %v72_v32 = vadd.f32 %v177_v29, %v63_v30 }
 0x13f   :  { %v73_v33 = vpack.c.bf16 %v72_v32, %v71_v31 }
 0x141   :  { %74 = vst.msk [vmem:[#allocation2] sm:$0xff] %vm27_vm0, %v73_v33 }
 0x148   :  { %v75_v34 = vld [vmem:[#allocation2] sm:$0xff] }
 0x149   :  { %199 = vmatmul.mubr.msk.bf16.vlgmr.msra.gmra.mrb[0].mxu0 %vm27_vm0, %v75_v34 }
 0x21c   :  { %v137_v36 = vpop.f32.mrb[0].mxu0 }
 0x21d   :  { %v138_v37 = vadd.f32 %v178_v35, %v137_v36  ;;  %v200_v38 = vpop.f32.mrb[1].mxu0 }
 0x21e   :  { %v140_v39 = vpop.f32.mrb[2].mxu0 }
 0x21f   :  { %v146_v40 = vmul.f32 0.044715, %v138_v37  ;;  %v141_v41 = vadd.f32 %v178_v35, %v140_v39  ;;  %v201_v42 = vpop.f32.mrb[3].mxu0  ;;  %v144_v55 = vmul.f32 0.5, %v138_v37 }
 0x221   :  { %v148_v43 = vmul.f32 %v146_v40, %v138_v37  ;;  %v147_v44 = vmul.f32 0.044715, %v141_v41  ;;  %v145_v56 = vmul.f32 0.5, %v141_v41 }
 0x223   :  { %v150_v45 = vmul.f32 %v148_v43, %v138_v37  ;;  %v149_v46 = vmul.f32 %v147_v44, %v141_v41 }
 0x225   :  { %v152_v47 = vadd.f32 %v150_v45, %v138_v37  ;;  %v151_v48 = vmul.f32 %v149_v46, %v141_v41 }
 0x227   :  { %v154_v49 = vmul.f32 0.7978846, %v152_v47  ;;  %v153_v50 = vadd.f32 %v151_v48, %v141_v41 }
 0x229   :  { %210 = vtanh.f32 %v154_v49  ;;  %v155_v51 = vmul.f32 0.7978846, %v153_v50 }
 0x22b   :  { %212 = vtanh.f32 %v155_v51 }
 0x233   :  { %v211_v52 = vpop.eup %210 }
 0x234   :  { %v158_v53 = vadd.f32 1.0, %v211_v52 }
 0x235   :  { %v213_v54 = vpop.eup %212 }
 0x236   :  { %v159_v57 = vadd.f32 1.0, %v213_v54  ;;  %v160_v58 = vmul.f32 %v158_v53, %v144_v55 }
 0x238   :  { %v161_v59 = vmul.f32 %v159_v57, %v145_v56 }
 0x23a   :  { %v189_v60 = vpack.c.bf16 %v161_v59, %v160_v58 }
 0x23c   :  { %190 = vst [vmem:[%s281_s5] sm:$0xff] %v189_v60  }

// kernel: gpt2_classifier_forward.16
= control target key start
LH: loop header
LB: loop body
LE: loop exit
PB: predicated region body
PF: predicated region fallthrough
CT: control target
= control target key end

     0   :  { %vm22_vm0 = vcmask 261120   ;;  %v219_v0 = vmov 0.0   ;;  %vm220_vm1 = vmmov 0   ;;  %s294_s1 = inlined_call_operand.vmem [shape: bf16[128,32], index: 1, kind: input, shape index: {}]   ;;  %s295_s0 = inlined_call_operand.vmem [shape: bf16[16,128], index: 0, kind: input, shape index: {}]   ;;  %s296_s2 = inlined_call_operand.vmem [shape: f32[1,32], index: 2, kind: input, shape index: {}]   ;;  %s297_s3 = inlined_call_operand.vmem [shape: f32[16,32], index: 3, kind: input, shape index: {}]   ;;  %s298_s4 = inlined_call_operand.vmem [shape: f32[16,32], index: 4, kind: output, shape index: {}]  }
   0x1   :  { %188 = vmatprep.subr.bf16.mxu0 %v219_v0  ;;  %v210_v1 = vld [vmem:[%s294_s1] sm:$0xff]   ;;  %204 = vmatprep.mubr.msk.bf16.mxu0 %vm220_vm1, %v219_v0  ;;  %23 = vst.msk [vmem:[#allocation2] sm:$0xff] %vm22_vm0, %v219_v0  ;;  %24 = vst.msk [vmem:[#allocation2 + $0x8] sm:$0xff] %vm22_vm0, %v219_v0  ;;  %v211_v2 = vld [vmem:[%s294_s1 + $0x8] sm:$0xff]  }
   0x2   :  { %189 = vmatpush3.bf16.msra.mxu0 %v210_v1  ;;  %v212_v3 = vld [vmem:[%s294_s1 + $0x10] sm:$0xff]   ;;  %v213_v4 = vld [vmem:[%s294_s1 + $0x18] sm:$0xff]   ;;  %v214_v5 = vld [vmem:[%s294_s1 + $0x20] sm:$0xff]  }
   0x3   :  { %190 = vmatprep.subr.bf16.mxu0 %v219_v0  ;;  %v215_v6 = vld [vmem:[%s294_s1 + $0x28] sm:$0xff]   ;;  %v216_v7 = vld [vmem:[%s294_s1 + $0x30] sm:$0xff]   ;;  %v217_v8 = vld [vmem:[%s294_s1 + $0x38] sm:$0xff]  }
   0x4   :  { %v218_v9 = vld [vmem:[%s295_s0] sm:$0xff]   ;;  %v160_v22 = vld [vmem:[%s297_s3 + $0x8] sm:$0xff] }
   0x5   :  { %v178_v18 = vld [vmem:[%s296_s2] ss:$0 sm:$0xff] }
   0x6   :  { %191 = vmatpush3.bf16.msra.mxu0 %v211_v2  ;;  %v159_v20 = vld [vmem:[%s297_s3] sm:$0xff] }
   0x7   :  { %192 = vmatprep.subr.bf16.mxu0 %v219_v0 }
   0x8   :  { %v25_v10 = vld [vmem:[#allocation2] sm:$0xff]  ;;  %v26_v12 = vld [vmem:[#allocation2 + $0x8] sm:$0xff] }
   0xa   :  { %193 = vmatpush3.bf16.msra.mxu0 %v212_v3 }
   0xb   :  { %194 = vmatprep.subr.bf16.mxu0 %v219_v0 }
   0xe   :  { %195 = vmatpush3.bf16.msra.mxu0 %v213_v4 }
   0xf   :  { %196 = vmatprep.subr.bf16.mxu0 %v219_v0 }
  0x12   :  { %197 = vmatpush3.bf16.msra.mxu0 %v214_v5 }
  0x13   :  { %198 = vmatprep.subr.bf16.mxu0 %v219_v0 }
  0x16   :  { %199 = vmatpush3.bf16.msra.mxu0 %v215_v6 }
  0x17   :  { %200 = vmatprep.subr.bf16.mxu0 %v219_v0 }
  0x1a   :  { %201 = vmatpush3.bf16.msra.mxu0 %v216_v7 }
  0x1b   :  { %202 = vmatprep.subr.bf16.mxu0 %v219_v0 }
  0x1e   :  { %203 = vmatpush3.bf16.msra.mxu0 %v217_v8 }
  0x21   :  { %205 = vmatmul.mubr.bf16.vlgmr.msra.gmra.mrb[0].mxu0 %v218_v9 }
  0xf4   :  { %v133_v11 = vpop.f32.mrb[0].mxu0 }
  0xf5   :  { %v140_v13 = vadd.f32 %v133_v11, %v25_v10  ;;  %v206_v14 = vpop.f32.mrb[1].mxu0 }
  0xf6   :  { %v136_v15 = vpop.f32.mrb[2].mxu0 }
  0xf7   :  { %143 = vst.msk [vmem:[#allocation2] sm:$0xff] %vm22_vm0, %v140_v13  ;;  %v141_v16 = vadd.f32 %v136_v15, %v26_v12  ;;  %v207_v17 = vpop.f32.mrb[3].mxu0 }
  0xf9   :  { %144 = vst.msk [vmem:[#allocation2 + $0x8] sm:$0xff] %vm22_vm0, %v141_v16 }
  0xfe   :  { %v148_v19 = vld [vmem:[#allocation2] sm:$0xff] }
  0xff   :  { %v157_v21 = vadd.f32 %v178_v18, %v148_v19 }
 0x100   :  { %v149_v23 = vld [vmem:[#allocation2 + $0x8] sm:$0xff] }
 0x101   :  { %v161_v24 = vadd.f32 %v159_v20, %v157_v21  ;;  %v158_v25 = vadd.f32 %v178_v18, %v149_v23 }
 0x103   :  { %163 = vst.msk [vmem:[%s298_s4] sm:$0xff] %vm22_vm0, %v161_v24  ;;  %v162_v26 = vadd.f32 %v160_v22, %v158_v25 }
 0x105   :  { %164 = vst.msk [vmem:[%s298_s4 + $0x8] sm:$0xff] %vm22_vm0, %v162_v26 }

// kernel: gpt2_classifier_forward.22
= control target key start
LH: loop header
LB: loop body
LE: loop exit
PB: predicated region body
PF: predicated region fallthrough
CT: control target
= control target key end

     0   :  { %vm16_vm0 = vcmask 261120   ;;  %vm70_vm1 = vcmask 257024   ;;  %s129_s0 = inlined_call_operand.vmem [shape: f32[16,32], index: 0, kind: input, shape index: {}]   ;;  %s130_s1 = inlined_call_operand.vmem [shape: f32[1,32], index: 1, kind: input, shape index: {}]   ;;  %s131_s2 = inlined_call_operand.vmem [shape: f32[1,32], index: 2, kind: input, shape index: {}]   ;;  %s132_s3 = inlined_call_operand.vmem [shape: bf16[16,32], index: 3, kind: output, shape index: {}]  }
   0x1   :  { %v14_v0 = vld [vmem:[%s129_s0] sm:$0xff]  ;;  %v15_v1 = vld [vmem:[%s129_s0 + $0x8] sm:$0xff] }
   0x2   :  { %v17_v2 = vsel %vm16_vm0, %v14_v0, 0.0  ;;  %v20_v3 = vsel %vm16_vm0, %v15_v1, 0.0  ;;  %v77_v21 = vld [vmem:[%s130_s1] ss:$0 sm:$0xff] }
   0x3   :  { %18 = vadd.xlane.f32.xlu0 %v17_v2  ;;  %v78_v23 = vld [vmem:[%s131_s2] ss:$0 sm:$0xff] }
   0x7   :  { %21 = vadd.xlane.f32.xlu0 %v20_v3 }
  0x90   :  { %v19_v4 = vpop.xlane.xlu0 %18 }
  0x91   :  { %v24_v5 = vmul.f32 0.03125, %v19_v4 }
  0x93   :  { %v26_v6 = vsub.f32 %v14_v0, %v24_v5 }
  0x94   :  { %v22_v7 = vpop.xlane.xlu0 %21 }
  0x95   :  { %v25_v8 = vmul.f32 0.03125, %v22_v7  ;;  %v28_v9 = vmul.f32 %v26_v6, %v26_v6 }
  0x97   :  { %v27_v10 = vsub.f32 %v15_v1, %v25_v8  ;;  %v30_v11 = vsel %vm16_vm0, %v28_v9, 0.0 }
  0x98   :  { %31 = vadd.xlane.f32.xlu1 %v30_v11 }
  0x99   :  { %v29_v12 = vmul.f32 %v27_v10, %v27_v10 }
  0x9b   :  { %v33_v13 = vsel %vm16_vm0, %v29_v12, 0.0 }
  0x9c   :  { %34 = vadd.xlane.f32.xlu1 %v33_v13 }
 0x125   :  { %v32_v14 = vpop.xlane.xlu1 %31 }
 0x126   :  { %v36_v15 = vmul.f32 0.03125, %v32_v14 }
 0x128   :  { %v38_v16 = vadd.f32 1e-05, %v36_v15 }
 0x129   :  { %v35_v17 = vpop.xlane.xlu1 %34 }
 0x12a   :  { %83 = vrsqrt.f32 %v38_v16  ;;  %v37_v18 = vmul.f32 0.03125, %v35_v17 }
 0x12c   :  { %v39_v19 = vadd.f32 1e-05, %v37_v18 }
 0x12e   :  { %85 = vrsqrt.f32 %v39_v19 }
 0x134   :  { %v84_v20 = vpop.eup %83 }
 0x135   :  { %v42_v22 = vmul.f32 %v84_v20, %v26_v6 }
 0x137   :  { %v51_v24 = vmul.f32 %v77_v21, %v42_v22 }
 0x138   :  { %v86_v25 = vpop.eup %85 }
 0x139   :  { %v60_v26 = vadd.f32 %v78_v23, %v51_v24  ;;  %v43_v27 = vmul.f32 %v86_v25, %v27_v10 }
 0x13b   :  { %v81_v28 = vpack.c.bf16 %v60_v26, %v60_v26  ;;  %v52_v29 = vmul.f32 %v77_v21, %v43_v27 }
 0x13d   :  { %71 = vst.msk [vmem:[%s132_s3] sm:$0xf] %vm70_vm1, %v81_v28  ;;  %v61_v30 = vadd.f32 %v78_v23, %v52_v29 }
 0x13f   :  { %v82_v31 = vpack.c.bf16 %v61_v30, %v61_v30 }
 0x141   :  { %72 = vst.msk [vmem:[%s132_s3 + $0x4] sm:$0xf] %vm70_vm1, %v82_v31 }

// kernel: gpt2_classifier_forward.23
= control target key start
LH: loop header
LB: loop body
LE: loop exit
PB: predicated region body
PF: predicated region fallthrough
CT: control target
= control target key end

     0   :  { %v68_v9 = vlaneseq  ;;  %v331_v13 = vmov 1966171168   ;;  %s423_s0 = inlined_call_operand.vmem [shape: bf16[2,256], index: 0, kind: input, shape index: {}]   ;;  %s424_s1 = inlined_call_operand.vmem [shape: bf16[256,8], index: 1, kind: input, shape index: {}]   ;;  %s425_s2 = inlined_call_operand.vmem [shape: f32[1,8], index: 2, kind: input, shape index: {}]   ;;  %s426_s3 = inlined_call_operand.hbm [shape: f32[2,8], index: 3, kind: output, shape index: {}]  }
   0x1   :  { %v291_v0 = vld [vmem:[%s424_s1 + $0x40] sm:$0xff]   ;;  %v293_v2 = vld [vmem:[%s424_s1 + $0x48] sm:$0xff]   ;;  %v295_v4 = vld [vmem:[%s424_s1 + $0x50] sm:$0xff]   ;;  %v66_v14 = vunpack.c.l.s4 %v331_v13 }
   0x2   :  { %v292_v1 = vld [vmem:[%s424_s1] sm:$0xff]   ;;  %266 = vmatprep.subr.bf16.mxu0 %v291_v0  ;;  %v294_v3 = vld [vmem:[%s424_s1 + $0x8] sm:$0xff]   ;;  %v296_v5 = vld [vmem:[%s424_s1 + $0x10] sm:$0xff]   ;;  %v69_v15 = vshrl.u32 %v68_v9, 7 }
   0x3   :  { %267 = vmatpush3.bf16.msra.mxu0 %v292_v1  ;;  %v297_v6 = vld [vmem:[%s424_s1 + $0x58] sm:$0xff]   ;;  %v299_v8 = vld [vmem:[%s424_s1 + $0x60] sm:$0xff]   ;;  %v301_v11 = vld [vmem:[%s424_s1 + $0x68] sm:$0xff]  }
   0x4   :  { %268 = vmatprep.subr.bf16.mxu0 %v293_v2  ;;  %v298_v7 = vld [vmem:[%s424_s1 + $0x18] sm:$0xff]   ;;  %v300_v10 = vld [vmem:[%s424_s1 + $0x20] sm:$0xff]  }
   0x5   :  { %v248_v12 = vld.sshfl [vmem:[%s423_s0] sm:$0x11 pattern:$0x75316420] }
   0x7   :  { %269 = vmatpush3.bf16.msra.mxu0 %v294_v3 }
   0x8   :  { %270 = vmatprep.subr.bf16.mxu0 %v295_v4 }
   0xb   :  { %271 = vmatpush3.bf16.msra.mxu0 %v296_v5 }
   0xc   :  { %272 = vmatprep.subr.bf16.mxu0 %v297_v6 }
   0xf   :  { %273 = vmatpush3.bf16.msra.mxu0 %v298_v7 }
  0x10   :  { %274 = vmatprep.subr.bf16.mxu0 %v299_v8 }
  0x11   :  { %8 = vsyncpa [#allocation4], 0  ;;  %v302_v16 = vld [vmem:[%s424_s1 + $0x28] sm:$0xff]   ;;  %v64_v17 = vcombine.high %v248_v12, %v248_v12  ;;  %v67_v18 = vunpack.c.0.s8 %v66_v14  ;;  %v303_v19 = vld [vmem:[%s424_s1 + $0x70] sm:$0xff]   ;;  %vm20_vm0 = vcmask 58368   ;;  %v332_v26 = vmov 0.0  }
  0x12   :  { %v304_v21 = vld [vmem:[%s424_s1 + $0x30] sm:$0xff]   ;;  %v305_v23 = vld [vmem:[%s424_s1 + $0x78] sm:$0xff]   ;;  %21 = vst.msk [vmem:[#allocation2] sm:$0x3] %vm20_vm0, %v332_v26  ;;  %v265_v34 = vld [vmem:[%s425_s2] ss:$0 sm:$0xff] }
  0x13   :  { %275 = vmatpush3.bf16.msra.mxu0 %v300_v10  ;;  %v70_v20 = vsub.s32 %v67_v18, %v69_v15  ;;  %v306_v24 = vld [vmem:[%s424_s1 + $0x38] sm:$0xff]   ;;  %s333_s1 = smov [#allocation3]  }
  0x14   :  { %276 = vmatprep.subr.bf16.mxu0 %v301_v11  ;;  %s240_s20 = sshll.u32 %s333_s1, 4  ;;  %s241_s20 = int_to_ptr.vmem [resolvable:$true] %s240_s20 }
  0x15   :  { %v78_v22 = vrot.slane %v64_v17, %v70_v20  ;;  %v71_v25 = vrot.slane %v248_v12, %v70_v20  ;;  %s307_s21 = scalar_lea.vmem %s241_s20, 32  ;;  %p312_p1 = scmp.lt.s32.totalorder %s241_s20, %s241_s20 }
  0x16   :  { %p308_p0 = scmp.ne.s32.totalorder %s241_s20, %s307_s21  ;;  %p313_p2 = scmp.lt.s32.totalorder %s307_s21, %s307_s21 }
  0x17   :  { %277 = vmatpush3.bf16.msra.mxu0 %v302_v16  ;;  %209 = vmatprep.mubr.bf16.mxu0 %v78_v22 }
  0x18   :  { %278 = vmatprep.subr.bf16.mxu0 %v303_v19  ;;  %p314_p3 = por %p313_p2, %p312_p1 }
  0x19   :  { %v22_v28 = vld [vmem:[#allocation2] sm:$0x3] }
  0x1a   :  { %p315_p4 = pnand %p314_p3, %p308_p0 }
  0x1b   :  { %279 = vmatpush3.bf16.msra.mxu0 %v304_v21 }
  0x1c   :  { %280 = vmatprep.subr.bf16.mxu0 %v305_v23 }
  0x1f   :  { %281 = vmatpush3.bf16.msra.mxu0 %v306_v24 }
  0x22   :  { %210 = vmatmul.mubr.bf16.vlgmr.msra.gmra.mrb[0].mxu0 %v71_v25 }
  0xf5   :  { %v282_v27 = vpop.f32.mrb[0].mxu0 }
  0xf6   :  { %v283_v29 = vpop.f32.mrb[1].mxu0 }
  0xf7   :  { %v284_v30 = vadd.f32 %v283_v29, %v282_v27  ;;  %v285_v31 = vpop.f32.mrb[2].mxu0 }
  0xf8   :  { %v286_v32 = vpop.f32.mrb[3].mxu0 }
  0xf9   :  { %v217_v33 = vadd.f32 %v284_v30, %v22_v28 }
  0xfb   :  { %219 = vst.msk [vmem:[#allocation2] sm:$0x3] %vm20_vm0, %v217_v33 }
 0x102   :  { %v223_v35 = vld [vmem:[#allocation2] sm:$0x3] }
 0x103   :  { %v231_v36 = vadd.f32 %v265_v34, %v223_v35 }
 0x105   :  { %v232_v37 = vmax.f32 %v231_v36, 0.0 }
 0x107   :  { %233 = vst.msk [vmem:[#allocation3] sm:$0x3] %vm20_vm0, %v232_v37 }
 0x108   :  { %318 = shalt.err (!%p315_p4)
}
 0x109   :  { %s319_s24 = scalar_lea.hbm %s426_s3, 32 }
 0x10a   :  { %p320_p5 = scmp.ne.s32.totalorder %s426_s3, %s319_s24  ;;  %p323_p6 = scmp.lt.u32.totalorder %s319_s24, %s426_s3 }
 0x10c   :  { %p325_p7 = pnand %p323_p6, %p320_p5 }
 0x10e   :  { %328 = shalt.err (!%p325_p7)
}
 0x10f   :  { %243 = dma.vmem_to_hbm [thread:$0]  %s241_s20, 32, %s426_s3, [#allocation4]  }
 0x110   :  { %329 = dma.done.wait [#allocation4], 32  }
 0x111   :  { %330 = vsyncadd [#allocation4], 4294967264 }
 0x112   :  { %247 = vsyncpa [#allocation4], 1 }

</bundles_post_ra>
